<compile_context>
chip_gen: v7x
topology: tpu7x:2x2x1
jax: 0.10.0
libtpu: 0.0.40
codegen_flags: <defaults>
</compile_context>

<pallas_src>
import functools
import math

import jax
import jax.numpy as jnp
import numpy as np
from jax.experimental import pallas as pl
from jax.experimental.pallas import tpu as pltpu


def _round_up(x, m):
    return ((x + m - 1) // m) * m


def _rel_mha_kernel(x_ref, pos_ref, *refs, seq_block, batch, dim_out, eps,
                    fused_qkv, use_vpu_scores):
    """One grid step handles `seq_block` sequence positions (= seq_block*batch rows).

    x_ref    : (seq_block*batch, dim_input)  word_embed rows (also the residual)
    pos_ref  : (seq_block*batch, dim_input)  relative-shifted positional rows
    weights  : bf16, q-path / r_net pre-scaled by 1/sqrt(dim_out)
    vec_do   : (3, dim_out)   rows = [bias_q/sqrt(d), bias_k, b_r/sqrt(d)]
    vec_di   : (2, dim_input) rows = [ln_gamma, ln_beta]
    out_ref  : (seq_block*batch, dim_input)
    """
    if fused_qkv:
        w_qkv_ref, w_r_ref, w_out_ref, vec_do_ref, vec_di_ref, out_ref = refs
    else:
        wq_ref, wk_ref, wv_ref, w_r_ref, w_out_ref, vec_do_ref, vec_di_ref, out_ref = refs

    rows = seq_block * batch
    x = x_ref[...]                                   # f32, kept for the residual
    xc = x.astype(w_r_ref.dtype)                     # bf16 MXU operand
    pc = pos_ref[...].astype(w_r_ref.dtype)

    if fused_qkv:
        # Single lane-dense matmul; dim_out % 128 == 0 so the column slices
        # below land exactly on (8,128) lane-tile boundaries (no retiling).
        qkv = jnp.dot(xc, w_qkv_ref[...], preferred_element_type=jnp.float32)
        q = qkv[:, :dim_out]
        k = qkv[:, dim_out:2 * dim_out]
        v2 = qkv[:, 2 * dim_out:]
    else:
        # dim_out not a multiple of 128: three separate matmuls avoid slicing
        # across a lane tile.
        q = jnp.dot(xc, wq_ref[...], preferred_element_type=jnp.float32)
        k = jnp.dot(xc, wk_ref[...], preferred_element_type=jnp.float32)
        v2 = jnp.dot(xc, wv_ref[...], preferred_element_type=jnp.float32)

    # r_net projection (softmax scale and bias b_r already folded in).
    pos_key = (jnp.dot(pc, w_r_ref[...], preferred_element_type=jnp.float32)
               + vec_do_ref[2:3, :])                 # (rows, Dout)

    bq = vec_do_ref[0:1, :]                          # (1, Dout), pre-scaled
    bk = vec_do_ref[1:2, :]                          # (1, Dout)

    # Fused score contraction:  AC + BD == <[q+bq, k+bk], [k, pos_key]>, so one
    # contraction over 2*Dout replaces the two separate score contractions.
    a2 = jnp.concatenate([q + bq, k + bk], axis=1)   # (rows, 2*Dout)
    b2 = jnp.concatenate([k, pos_key], axis=1)       # (rows, 2*Dout)
    a_feat = a2.reshape(seq_block, batch, 2 * dim_out)
    b_feat = b2.reshape(seq_block, batch, 2 * dim_out)
    v3 = v2.reshape(seq_block, batch, dim_out)

    if use_vpu_scores:
        # Small-batch path: VPU multiply + lane reduce, one batch column at a
        # time, so live temporaries stay input-sized (no 4-D f32 blow-up).
        cols = []
        for c in range(batch):
            cols.append(jnp.sum(a_feat * b_feat[:, c:c + 1, :],
                                axis=-1, keepdims=True))          # (TL, B, 1)
        pre = jnp.concatenate(cols, axis=-1)                      # (TL, B, B)
    else:
        pre = jnp.einsum("lbd,lcd->lbc",
                         a_feat.astype(w_r_ref.dtype),
                         b_feat.astype(w_r_ref.dtype),
                         preferred_element_type=jnp.float32)      # (TL, B, B)

    # softmax over last axis (f32, denom reciprocal on the EUP slot).
    m = jnp.max(pre, axis=-1, keepdims=True)
    e = jnp.exp(pre - m)
    prob = e * pl.reciprocal(jnp.sum(e, axis=-1, keepdims=True), approx=True)

    if use_vpu_scores:
        attn3 = prob[:, :, 0:1] * v3[:, 0:1, :]
        for c in range(1, batch):
            attn3 = attn3 + prob[:, :, c:c + 1] * v3[:, c:c + 1, :]
    else:
        attn3 = jnp.einsum("lbc,lcd->lbd",
                           prob.astype(w_r_ref.dtype),
                           v3.astype(w_r_ref.dtype),
                           preferred_element_type=jnp.float32)    # (TL, B, Dout)
    attn = attn3.reshape(rows, dim_out)

    # Output projection, flattened and lane-dense.
    o = jnp.dot(attn.astype(w_out_ref.dtype), w_out_ref[...],
                preferred_element_type=jnp.float32)               # (rows, Din)

    # Residual + LayerNorm (post-norm path); `centered` computed once, reused.
    res = x + o
    centered = res - jnp.mean(res, axis=-1, keepdims=True)
    var = jnp.mean(centered * centered, axis=-1, keepdims=True)
    normed = centered * jax.lax.rsqrt(var + eps)
    out_ref[...] = (normed * vec_di_ref[0:1, :] + vec_di_ref[1:2, :]).astype(out_ref.dtype)


def _relative_shift(pos_embed):
    """Pure-JAX glue, identical to the module's _relative_shift (zero_triu=False)."""
    L, B, D = pos_embed.shape
    zero_pad = jnp.zeros((L, 1, D), pos_embed.dtype)
    x_padded = jnp.concatenate([zero_pad, pos_embed], axis=1)     # (L, B+1, D)
    x_padded = x_padded.reshape(B + 1, L, D)
    return x_padded[1:].reshape(L, B, D)


def _chip_info():
    """(vmem_capacity_bytes, VPU-score batch threshold) with safe fallbacks."""
    vmem_cap = 64 * 1024 * 1024            # conservative default (v7x per-TC VMEM)
    try:
        vmem_cap = int(pltpu.get_tpu_info().vmem_capacity_bytes)
    except Exception:
        pass
    thresh = 8
    try:
        kind = jax.devices()[0].device_kind.lower()
        # 256-wide MXUs (v6e / v7x): tiny (B,B) batched matmuls are <=12%
        # utilized, so keep the fused VPU score path up to a larger batch.
        if not any(v in kind for v in ("v2", "v3", "v4", "v5")):
            thresh = 16
    except Exception:
        pass
    return vmem_cap, thresh


def relative_multi_head_attention(word_embed, pos_embed, bias_q, bias_k, params,
                                  *, num_heads, dim_head, eps=1e-5,
                                  seq_block=None, compute_dtype=jnp.bfloat16,
                                  vpu_batch_threshold=None):
    L, B, dim_input = word_embed.shape
    dim_out = num_heads * dim_head
    assert pos_embed.shape == (L, B, dim_input)

    shifted = _relative_shift(pos_embed)
    inv_scale = 1.0 / math.sqrt(dim_out)

    # ---- parameter prep (glue): transpose so the kernel computes x @ W, fold
    # the softmax scale into the q / pos-key paths, cast MXU weights to bf16.
    w_qkv = params["w_qkv"]                                       # (3*Dout, Din)
    wq = (w_qkv[:dim_out].T * inv_scale).astype(compute_dtype)
    wk = w_qkv[dim_out:2 * dim_out].T.astype(compute_dtype)
    wv = w_qkv[2 * dim_out:].T.astype(compute_dtype)
    fused_qkv = (dim_out % 128 == 0)
    if fused_qkv:
        qkv_weights = [jnp.concatenate([wq, wk, wv], axis=1)]     # (Din, 3*Dout)
    else:
        qkv_weights = [wq, wk, wv]                                # 3 x (Din, Dout)
    w_r = (params["w_r"].T * inv_scale).astype(compute_dtype)     # (Din, Dout)
    w_out = params["w_out"].T.astype(compute_dtype)               # (Dout, Din)
    # TODO(synk): optional fp8 weight path on v7x when MXU-bound at large Din/Dout.

    # Packed small constants (2 specs instead of 5).
    vec_do = jnp.stack([bias_q * inv_scale, bias_k,
                        params["b_r"] * inv_scale]).astype(jnp.float32)   # (3, Dout)
    vec_di = jnp.stack([params["ln_gamma"],
                        params["ln_beta"]]).astype(jnp.float32)           # (2, Din)
    const_inputs = qkv_weights + [w_r, w_out, vec_do, vec_di]

    # ---- generation-aware sizing.
    vmem_cap, default_thresh = _chip_info()
    if vpu_batch_threshold is None:
        vpu_batch_threshold = default_thresh
    use_vpu_scores = B <= vpu_batch_threshold

    vmem_limit = max(32 * 1024 * 1024,
                     min(int(0.72 * vmem_cap), 127 * 1024 * 1024))

    # Sublane alignment: seq_block * B must be a multiple of 8.
    align = 8 // math.gcd(B, 8)

    weight_bytes = 2 * sum(int(np.prod(w.shape)) * w.dtype.itemsize
                           for w in const_inputs)    # worst case: double-buffered
    Bp = _round_up(B, 8)
    Dop = _round_up(dim_out, 128)
    Dip = _round_up(dim_input, 128)
    # Rough per-sequence-position VMEM bytes of the block working set (f32).
    per_pos = int(4 * (8 * B * Dip          # x/p/out double-buffered + LN epilogue
                       + 4 * B * Dop        # 2-D qkv / pos_key f32 intermediates
                       + 14 * Bp * Dop      # 3-D a_feat/b_feat/score-temp/v/attn
                       + 3 * Bp * 128))     # (TL,B,B) score / softmax tiles
    budget = max(per_pos, int(0.6 * vmem_limit) - weight_bytes)

    if seq_block is None:
        seq_block = min(L, budget // per_pos, 512)
        if L > align:
            # Keep at least 2 L-blocks so the "parallel" axis can shard across
            # both TensorCores on v7x (harmless on single-TC v5e/v6e).
            seq_block = min(seq_block, -(-L // 2))
    # Round to sublane alignment instead of collapsing to the whole L.
    seq_block = int(max(align, (min(int(seq_block), L) // align) * align))

    n_blocks = int(pl.cdiv(L, seq_block))
    Lp = n_blocks * seq_block

    x2 = word_embed
    p2 = shifted
    if Lp != L:
        # TODO(synk): handle the ragged tail in-kernel (masked rows) to avoid
        # this extra HBM round trip; padded rows are benign because eps > 0
        # keeps their LayerNorm finite and they are dropped afterwards.
        pad = ((0, Lp - L), (0, 0), (0, 0))
        x2 = jnp.pad(x2, pad)
        p2 = jnp.pad(p2, pad)
    # Flatten to lane-dense 2-D slabs for the in-kernel matmuls and the store.
    x2 = x2.reshape(Lp * B, dim_input)
    p2 = p2.reshape(Lp * B, dim_input)

    rows = seq_block * B
    seq_spec = pl.BlockSpec((rows, dim_input), lambda i: (i, 0))
    # TODO(synk): present a lane-dense / 128-padded output slab when
    # dim_input < 128; production dim_input is assumed a multiple of 128.

    kernel = functools.partial(_rel_mha_kernel, seq_block=seq_block, batch=B,
                               dim_out=dim_out, eps=eps, fused_qkv=fused_qkv,
                               use_vpu_scores=use_vpu_scores)

    def _const_spec(arr, single_buffer):
        zeros = (0,) * arr.ndim
        if single_buffer:
            # Grid-invariant weights/constants: one resident VMEM copy suffices.
            return pl.BlockSpec(arr.shape, lambda i: zeros,
                                pipeline_mode=pl.Buffered(1))
        return pl.BlockSpec(arr.shape, lambda i: zeros)

    def _run(single_buffer_weights):
        in_specs = [seq_spec, seq_spec] + [
            _const_spec(a, single_buffer_weights) for a in const_inputs]
        call = pl.pallas_call(
            kernel,
            out_shape=jax.ShapeDtypeStruct((Lp * B, dim_input), word_embed.dtype),
            grid=(n_blocks,),
            in_specs=in_specs,
            out_specs=seq_spec,
            compiler_params=pltpu.CompilerParams(
                dimension_semantics=("parallel",),   # L-blocks shard across TCs
                vmem_limit_bytes=int(vmem_limit)),
        )
        return call(x2, p2, *const_inputs)

    try:
        out2 = jax.block_until_ready(_run(hasattr(pl, "Buffered")))
    except Exception:
        # Fallback: default double-buffered specs (older jax / unsupported
        # single-buffering).
        out2 = _run(False)

    out = out2.reshape(Lp, B, dim_input)
    if Lp != L:
        out = out[:L]
    return out


def reference(word_embed, pos_embed, bias_q, bias_k, params, *, num_heads, dim_head, eps=1e-5):
    """Plain-JAX transcription of the PyTorch forward (for correctness check)."""
    L, B, dim_input = word_embed.shape
    dim_out = num_heads * dim_head
    input_ = word_embed
    qkv = input_ @ params["w_qkv"].T
    q, k, v = jnp.split(qkv, 3, axis=-1)
    shifted = _relative_shift(pos_embed)
    pos_key = shifted @ params["w_r"].T + params["b_r"]
    ac = jnp.einsum("lbd,lcd->lbc", q + bias_q, k)
    bd = jnp.einsum("lbd,lcd->lbc", k + bias_k, pos_key)
    pre = (ac + bd) / (dim_out ** 0.5)
    prob = jax.nn.softmax(pre, axis=-1)
    attn = jnp.einsum("lbc,lcd->lbd", prob, v)
    out = attn @ params["w_out"].T
    res = word_embed + out
    mean = res.mean(-1, keepdims=True)
    var = ((res - mean) ** 2).mean(-1, keepdims=True)
    return (res - mean) / jnp.sqrt(var + eps) * params["ln_gamma"] + params["ln_beta"]


if __name__ == "__main__":
    num_heads, dim_head, dim_input = 4, 8, 32
    dim_out = num_heads * dim_head
    L, B = 8, 2  # query_len == pos_len, batch

    key = jax.random.PRNGKey(0)
    ks = jax.random.split(key, 8)
    params = {
        "w_qkv": 0.05 * jax.random.normal(ks[0], (3 * dim_out, dim_input), jnp.float32),
        "w_out": 0.05 * jax.random.normal(ks[1], (dim_input, dim_out), jnp.float32),
        "w_r":   0.05 * jax.random.normal(ks[2], (dim_out, dim_input), jnp.float32),
        "b_r":   0.05 * jax.random.normal(ks[3], (dim_out,), jnp.float32),
        "ln_gamma": jnp.ones((dim_input,), jnp.float32),
        "ln_beta":  jnp.zeros((dim_input,), jnp.float32),
    }
    word_embed = jax.random.normal(ks[4], (L, B, dim_input), jnp.float32)
    pos_embed = jax.random.normal(ks[5], (L, B, dim_input), jnp.float32)
    bias_q = 0.1 * jax.random.normal(ks[6], (dim_out,), jnp.float32)
    bias_k = 0.1 * jax.random.normal(ks[7], (dim_out,), jnp.float32)

    out = relative_multi_head_attention(
        word_embed, pos_embed, bias_q, bias_k, params,
        num_heads=num_heads, dim_head=dim_head, seq_block=4)   # 2 L-blocks -> grid=(2,)
    out = jax.block_until_ready(out)

    ref = reference(word_embed, pos_embed, bias_q, bias_k, params,
                    num_heads=num_heads, dim_head=dim_head)
    # bf16 MXU operands + approx softmax reciprocal -> relaxed tolerance.
    np.testing.assert_allclose(np.asarray(out), np.asarray(ref), rtol=2e-2, atol=2e-2)

    print("KERNEL_OK")
</pallas_src>

<mosaic_0001>
module attributes {stable_mosaic.version = 11 : i64} {
  func.func @_rel_mha_kernel(%arg0: i32, %arg1: memref<8x32xf32, #tpu.memory_space<vmem>>, %arg2: memref<8x32xf32, #tpu.memory_space<vmem>>, %arg3: memref<32x32xbf16, #tpu.memory_space<vmem>>, %arg4: memref<32x32xbf16, #tpu.memory_space<vmem>>, %arg5: memref<32x32xbf16, #tpu.memory_space<vmem>>, %arg6: memref<32x32xbf16, #tpu.memory_space<vmem>>, %arg7: memref<32x32xbf16, #tpu.memory_space<vmem>>, %arg8: memref<3x32xf32, #tpu.memory_space<vmem>>, %arg9: memref<2x32xf32, #tpu.memory_space<vmem>>, %arg10: memref<8x32xf32, #tpu.memory_space<vmem>>) attributes {dimension_semantics = [#tpu.dimension_semantics<parallel>], iteration_bounds = array<i64: 2>, scalar_prefetch = 0 : i64, scratch_operands = 0 : i64, tpu.core_type = #tpu.core_type<tc>, window_params = [{transform_indices = @transform_0, window_bounds = array<i64: 8, 32>}, {transform_indices = @transform_1, window_bounds = array<i64: 8, 32>}, {pipeline_mode = #tpu.pipeline_mode<synchronous>, transform_indices = @transform_2, window_bounds = array<i64: 32, 32>}, {pipeline_mode = #tpu.pipeline_mode<synchronous>, transform_indices = @transform_3, window_bounds = array<i64: 32, 32>}, {pipeline_mode = #tpu.pipeline_mode<synchronous>, transform_indices = @transform_4, window_bounds = array<i64: 32, 32>}, {pipeline_mode = #tpu.pipeline_mode<synchronous>, transform_indices = @transform_5, window_bounds = array<i64: 32, 32>}, {pipeline_mode = #tpu.pipeline_mode<synchronous>, transform_indices = @transform_6, window_bounds = array<i64: 32, 32>}, {pipeline_mode = #tpu.pipeline_mode<synchronous>, transform_indices = @transform_7, window_bounds = array<i64: 3, 32>}, {pipeline_mode = #tpu.pipeline_mode<synchronous>, transform_indices = @transform_8, window_bounds = array<i64: 2, 32>}, {transform_indices = @transform_9, window_bounds = array<i64: 8, 32>}]} {
    %c0 = arith.constant 0 : index
    %c0_0 = arith.constant 0 : index
    %0 = vector.load %arg1[%c0, %c0_0] : memref<8x32xf32, #tpu.memory_space<vmem>>, vector<8x32xf32>
    %1 = arith.truncf %0 : vector<8x32xf32> to vector<8x32xbf16>
    %c0_1 = arith.constant 0 : index
    %c0_2 = arith.constant 0 : index
    %2 = vector.load %arg2[%c0_1, %c0_2] : memref<8x32xf32, #tpu.memory_space<vmem>>, vector<8x32xf32>
    %3 = arith.truncf %2 : vector<8x32xf32> to vector<8x32xbf16>
    %c0_3 = arith.constant 0 : index
    %c0_4 = arith.constant 0 : index
    %4 = vector.load %arg3[%c0_3, %c0_4] : memref<32x32xbf16, #tpu.memory_space<vmem>>, vector<32x32xbf16>
    %cst = arith.constant dense<0.000000e+00> : vector<8x32xf32>
    %5 = tpu.matmul %1, %4, %cst {dimension_numbers = #tpu.dot_dimension_numbers<[1], [0], [0], [1], [0, 0, 1, 1], [], []>} : vector<8x32xbf16>, vector<32x32xbf16>, vector<8x32xf32> -> vector<8x32xf32>
    %c0_5 = arith.constant 0 : index
    %c0_6 = arith.constant 0 : index
    %6 = vector.load %arg4[%c0_5, %c0_6] : memref<32x32xbf16, #tpu.memory_space<vmem>>, vector<32x32xbf16>
    %cst_7 = arith.constant dense<0.000000e+00> : vector<8x32xf32>
    %7 = tpu.matmul %1, %6, %cst_7 {dimension_numbers = #tpu.dot_dimension_numbers<[1], [0], [0], [1], [0, 0, 1, 1], [], []>} : vector<8x32xbf16>, vector<32x32xbf16>, vector<8x32xf32> -> vector<8x32xf32>
    %c0_8 = arith.constant 0 : index
    %c0_9 = arith.constant 0 : index
    %8 = vector.load %arg5[%c0_8, %c0_9] : memref<32x32xbf16, #tpu.memory_space<vmem>>, vector<32x32xbf16>
    %cst_10 = arith.constant dense<0.000000e+00> : vector<8x32xf32>
    %9 = tpu.matmul %1, %8, %cst_10 {dimension_numbers = #tpu.dot_dimension_numbers<[1], [0], [0], [1], [0, 0, 1, 1], [], []>} : vector<8x32xbf16>, vector<32x32xbf16>, vector<8x32xf32> -> vector<8x32xf32>
    %c0_11 = arith.constant 0 : index
    %c0_12 = arith.constant 0 : index
    %10 = vector.load %arg6[%c0_11, %c0_12] : memref<32x32xbf16, #tpu.memory_space<vmem>>, vector<32x32xbf16>
    %cst_13 = arith.constant dense<0.000000e+00> : vector<8x32xf32>
    %11 = tpu.matmul %3, %10, %cst_13 {dimension_numbers = #tpu.dot_dimension_numbers<[1], [0], [0], [1], [0, 0, 1, 1], [], []>} : vector<8x32xbf16>, vector<32x32xbf16>, vector<8x32xf32> -> vector<8x32xf32>
    %c2 = arith.constant 2 : index
    %c0_14 = arith.constant 0 : index
    %12 = vector.load %arg8[%c2, %c0_14] : memref<3x32xf32, #tpu.memory_space<vmem>>, vector<1x32xf32>
    %13 = vector.broadcast %12 : vector<1x32xf32> to vector<8x32xf32>
    %14 = arith.addf %11, %13 : vector<8x32xf32>
    %c0_15 = arith.constant 0 : index
    %c0_16 = arith.constant 0 : index
    %15 = vector.load %arg8[%c0_15, %c0_16] : memref<3x32xf32, #tpu.memory_space<vmem>>, vector<1x32xf32>
    %c1 = arith.constant 1 : index
    %c0_17 = arith.constant 0 : index
    %16 = vector.load %arg8[%c1, %c0_17] : memref<3x32xf32, #tpu.memory_space<vmem>>, vector<1x32xf32>
    %17 = vector.broadcast %15 : vector<1x32xf32> to vector<8x32xf32>
    %18 = arith.addf %5, %17 : vector<8x32xf32>
    %19 = vector.broadcast %16 : vector<1x32xf32> to vector<8x32xf32>
    %20 = arith.addf %7, %19 : vector<8x32xf32>
    %21 = tpu.concatenate %18, %20 in 1 : vector<8x32xf32>, vector<8x32xf32> -> vector<8x64xf32>
    %22 = tpu.concatenate %7, %14 in 1 : vector<8x32xf32>, vector<8x32xf32> -> vector<8x64xf32>
    %23 = vector.shape_cast %21 : vector<8x64xf32> to vector<4x2x64xf32>
    %24 = vector.shape_cast %22 : vector<8x64xf32> to vector<4x2x64xf32>
    %25 = vector.shape_cast %9 : vector<8x32xf32> to vector<4x2x32xf32>
    %26 = vector.extract_strided_slice %24 {offsets = [0, 0, 0], sizes = [4, 1, 64], strides = [1, 1, 1]} : vector<4x2x64xf32> to vector<4x1x64xf32>
    %27 = vector.broadcast %26 : vector<4x1x64xf32> to vector<4x2x64xf32>
    %28 = arith.mulf %23, %27 : vector<4x2x64xf32>
    %cst_18 = arith.constant dense<0.000000e+00> : vector<4x2xf32>
    %29 = vector.multi_reduction <add>, %28, %cst_18 [2] : vector<4x2x64xf32> to vector<4x2xf32>
    %30 = vector.shape_cast %29 : vector<4x2xf32> to vector<4x2x1xf32>
    %31 = vector.extract_strided_slice %24 {offsets = [0, 1, 0], sizes = [4, 1, 64], strides = [1, 1, 1]} : vector<4x2x64xf32> to vector<4x1x64xf32>
    %32 = vector.broadcast %31 : vector<4x1x64xf32> to vector<4x2x64xf32>
    %33 = arith.mulf %23, %32 : vector<4x2x64xf32>
    %cst_19 = arith.constant dense<0.000000e+00> : vector<4x2xf32>
    %34 = vector.multi_reduction <add>, %33, %cst_19 [2] : vector<4x2x64xf32> to vector<4x2xf32>
    %35 = vector.shape_cast %34 : vector<4x2xf32> to vector<4x2x1xf32>
    %36 = tpu.concatenate %30, %35 in 2 : vector<4x2x1xf32>, vector<4x2x1xf32> -> vector<4x2x2xf32>
    %cst_20 = arith.constant dense<0xFF800000> : vector<4x2xf32>
    %37 = vector.multi_reduction <maximumf>, %36, %cst_20 [2] : vector<4x2x2xf32> to vector<4x2xf32>
    %38 = vector.shape_cast %37 : vector<4x2xf32> to vector<4x2x1xf32>
    %39 = vector.broadcast %38 : vector<4x2x1xf32> to vector<4x2x2xf32>
    %40 = arith.subf %36, %39 : vector<4x2x2xf32>
    %41 = math.exp %40 : vector<4x2x2xf32>
    %cst_21 = arith.constant dense<0.000000e+00> : vector<4x2xf32>
    %42 = vector.multi_reduction <add>, %41, %cst_21 [2] : vector<4x2x2xf32> to vector<4x2xf32>
    %43 = vector.shape_cast %42 : vector<4x2xf32> to vector<4x2x1xf32>
    %44 = tpu.reciprocal %43 {approx = true} : vector<4x2x1xf32> -> vector<4x2x1xf32>
    %45 = vector.broadcast %44 : vector<4x2x1xf32> to vector<4x2x2xf32>
    %46 = arith.mulf %41, %45 : vector<4x2x2xf32>
    %47 = vector.extract_strided_slice %46 {offsets = [0, 0, 0], sizes = [4, 2, 1], strides = [1, 1, 1]} : vector<4x2x2xf32> to vector<4x2x1xf32>
    %48 = vector.extract_strided_slice %25 {offsets = [0, 0, 0], sizes = [4, 1, 32], strides = [1, 1, 1]} : vector<4x2x32xf32> to vector<4x1x32xf32>
    %49 = vector.broadcast %47 : vector<4x2x1xf32> to vector<4x2x32xf32>
    %50 = vector.broadcast %48 : vector<4x1x32xf32> to vector<4x2x32xf32>
    %51 = arith.mulf %49, %50 : vector<4x2x32xf32>
    %52 = vector.extract_strided_slice %46 {offsets = [0, 0, 1], sizes = [4, 2, 1], strides = [1, 1, 1]} : vector<4x2x2xf32> to vector<4x2x1xf32>
    %53 = vector.extract_strided_slice %25 {offsets = [0, 1, 0], sizes = [4, 1, 32], strides = [1, 1, 1]} : vector<4x2x32xf32> to vector<4x1x32xf32>
    %54 = vector.broadcast %52 : vector<4x2x1xf32> to vector<4x2x32xf32>
    %55 = vector.broadcast %53 : vector<4x1x32xf32> to vector<4x2x32xf32>
    %56 = arith.mulf %54, %55 : vector<4x2x32xf32>
    %57 = arith.addf %51, %56 : vector<4x2x32xf32>
    %58 = vector.shape_cast %57 : vector<4x2x32xf32> to vector<8x32xf32>
    %59 = arith.truncf %58 : vector<8x32xf32> to vector<8x32xbf16>
    %c0_22 = arith.constant 0 : index
    %c0_23 = arith.constant 0 : index
    %60 = vector.load %arg7[%c0_22, %c0_23] : memref<32x32xbf16, #tpu.memory_space<vmem>>, vector<32x32xbf16>
    %cst_24 = arith.constant dense<0.000000e+00> : vector<8x32xf32>
    %61 = tpu.matmul %59, %60, %cst_24 {dimension_numbers = #tpu.dot_dimension_numbers<[1], [0], [0], [1], [0, 0, 1, 1], [], []>} : vector<8x32xbf16>, vector<32x32xbf16>, vector<8x32xf32> -> vector<8x32xf32>
    %62 = arith.addf %0, %61 : vector<8x32xf32>
    %cst_25 = arith.constant dense<0.000000e+00> : vector<8xf32>
    %63 = vector.multi_reduction <add>, %62, %cst_25 [1] : vector<8x32xf32> to vector<8xf32>
    %64 = vector.shape_cast %63 : vector<8xf32> to vector<8x1xf32>
    %cst_26 = arith.constant 3.200000e+01 : f32
    %65 = vector.broadcast %cst_26 : f32 to vector<8x1xf32>
    %66 = arith.divf %64, %65 : vector<8x1xf32>
    %67 = vector.broadcast %66 : vector<8x1xf32> to vector<8x32xf32>
    %68 = arith.subf %62, %67 : vector<8x32xf32>
    %69 = arith.mulf %68, %68 : vector<8x32xf32>
    %cst_27 = arith.constant dense<0.000000e+00> : vector<8xf32>
    %70 = vector.multi_reduction <add>, %69, %cst_27 [1] : vector<8x32xf32> to vector<8xf32>
    %71 = vector.shape_cast %70 : vector<8xf32> to vector<8x1xf32>
    %cst_28 = arith.constant 3.200000e+01 : f32
    %72 = vector.broadcast %cst_28 : f32 to vector<8x1xf32>
    %73 = arith.divf %71, %72 : vector<8x1xf32>
    %cst_29 = arith.constant 9.99999974E-6 : f32
    %74 = vector.broadcast %cst_29 : f32 to vector<8x1xf32>
    %75 = arith.addf %73, %74 : vector<8x1xf32>
    %76 = math.rsqrt %75 : vector<8x1xf32>
    %77 = vector.broadcast %76 : vector<8x1xf32> to vector<8x32xf32>
    %78 = arith.mulf %68, %77 : vector<8x32xf32>
    %c0_30 = arith.constant 0 : index
    %c0_31 = arith.constant 0 : index
    %79 = vector.load %arg9[%c0_30, %c0_31] : memref<2x32xf32, #tpu.memory_space<vmem>>, vector<1x32xf32>
    %80 = vector.broadcast %79 : vector<1x32xf32> to vector<8x32xf32>
    %81 = arith.mulf %78, %80 : vector<8x32xf32>
    %c1_32 = arith.constant 1 : index
    %c0_33 = arith.constant 0 : index
    %82 = vector.load %arg9[%c1_32, %c0_33] : memref<2x32xf32, #tpu.memory_space<vmem>>, vector<1x32xf32>
    %83 = vector.broadcast %82 : vector<1x32xf32> to vector<8x32xf32>
    %84 = arith.addf %81, %83 : vector<8x32xf32>
    %c0_34 = arith.constant 0 : index
    %c0_35 = arith.constant 0 : index
    %85 = vector.load %arg10[%c0_34, %c0_35] : memref<8x32xf32, #tpu.memory_space<vmem>>, vector<8x32xf32>
    tpu.vector_store %arg10[%c0_34, %c0_35], %84 {strides = array<i32>} : memref<8x32xf32, #tpu.memory_space<vmem>>, vector<8x32xf32>,
    return
  }
  func.func @transform_0(%arg0: i32) -> (i32, i32) {
    %c0_i32 = arith.constant 0 : i32
    %c0_i32_0 = arith.constant 0 : i32
    return %arg0, %c0_i32 : i32, i32
  }
  func.func @transform_1(%arg0: i32) -> (i32, i32) {
    %c0_i32 = arith.constant 0 : i32
    %c0_i32_0 = arith.constant 0 : i32
    return %arg0, %c0_i32 : i32, i32
  }
  func.func @transform_2(%arg0: i32) -> (i32, i32) {
    %c0_i32 = arith.constant 0 : i32
    %c0_i32_0 = arith.constant 0 : i32
    %c0_i32_1 = arith.constant 0 : i32
    return %c0_i32, %c0_i32_0 : i32, i32
  }
  func.func @transform_3(%arg0: i32) -> (i32, i32) {
    %c0_i32 = arith.constant 0 : i32
    %c0_i32_0 = arith.constant 0 : i32
    %c0_i32_1 = arith.constant 0 : i32
    return %c0_i32, %c0_i32_0 : i32, i32
  }
  func.func @transform_4(%arg0: i32) -> (i32, i32) {
    %c0_i32 = arith.constant 0 : i32
    %c0_i32_0 = arith.constant 0 : i32
    %c0_i32_1 = arith.constant 0 : i32
    return %c0_i32, %c0_i32_0 : i32, i32
  }
  func.func @transform_5(%arg0: i32) -> (i32, i32) {
    %c0_i32 = arith.constant 0 : i32
    %c0_i32_0 = arith.constant 0 : i32
    %c0_i32_1 = arith.constant 0 : i32
    return %c0_i32, %c0_i32_0 : i32, i32
  }
  func.func @transform_6(%arg0: i32) -> (i32, i32) {
    %c0_i32 = arith.constant 0 : i32
    %c0_i32_0 = arith.constant 0 : i32
    %c0_i32_1 = arith.constant 0 : i32
    return %c0_i32, %c0_i32_0 : i32, i32
  }
  func.func @transform_7(%arg0: i32) -> (i32, i32) {
    %c0_i32 = arith.constant 0 : i32
    %c0_i32_0 = arith.constant 0 : i32
    %c0_i32_1 = arith.constant 0 : i32
    return %c0_i32, %c0_i32_0 : i32, i32
  }
  func.func @transform_8(%arg0: i32) -> (i32, i32) {
    %c0_i32 = arith.constant 0 : i32
    %c0_i32_0 = arith.constant 0 : i32
    %c0_i32_1 = arith.constant 0 : i32
    return %c0_i32, %c0_i32_0 : i32, i32
  }
  func.func @transform_9(%arg0: i32) -> (i32, i32) {
    %c0_i32 = arith.constant 0 : i32
    %c0_i32_0 = arith.constant 0 : i32
    return %arg0, %c0_i32 : i32, i32
  }
}

module attributes {stable_mosaic.version = 11 : i64} {
  func.func @_rel_mha_kernel(%arg0: i32, %arg1: memref<8x32xf32, #tpu.memory_space<vmem>>, %arg2: memref<8x32xf32, #tpu.memory_space<vmem>>, %arg3: memref<32x32xbf16, #tpu.memory_space<vmem>>, %arg4: memref<32x32xbf16, #tpu.memory_space<vmem>>, %arg5: memref<32x32xbf16, #tpu.memory_space<vmem>>, %arg6: memref<32x32xbf16, #tpu.memory_space<vmem>>, %arg7: memref<32x32xbf16, #tpu.memory_space<vmem>>, %arg8: memref<3x32xf32, #tpu.memory_space<vmem>>, %arg9: memref<2x32xf32, #tpu.memory_space<vmem>>, %arg10: memref<8x32xf32, #tpu.memory_space<vmem>>) attributes {dimension_semantics = [#tpu.dimension_semantics<parallel>], iteration_bounds = array<i64: 2>, scalar_prefetch = 0 : i64, scratch_operands = 0 : i64, tpu.core_type = #tpu.core_type<tc>, window_params = [{transform_indices = @transform_0, window_bounds = array<i64: 8, 32>}, {transform_indices = @transform_1, window_bounds = array<i64: 8, 32>}, {pipeline_mode = #tpu.pipeline_mode<synchronous>, transform_indices = @transform_2, window_bounds = array<i64: 32, 32>}, {pipeline_mode = #tpu.pipeline_mode<synchronous>, transform_indices = @transform_3, window_bounds = array<i64: 32, 32>}, {pipeline_mode = #tpu.pipeline_mode<synchronous>, transform_indices = @transform_4, window_bounds = array<i64: 32, 32>}, {pipeline_mode = #tpu.pipeline_mode<synchronous>, transform_indices = @transform_5, window_bounds = array<i64: 32, 32>}, {pipeline_mode = #tpu.pipeline_mode<synchronous>, transform_indices = @transform_6, window_bounds = array<i64: 32, 32>}, {pipeline_mode = #tpu.pipeline_mode<synchronous>, transform_indices = @transform_7, window_bounds = array<i64: 3, 32>}, {pipeline_mode = #tpu.pipeline_mode<synchronous>, transform_indices = @transform_8, window_bounds = array<i64: 2, 32>}, {transform_indices = @transform_9, window_bounds = array<i64: 8, 32>}]} {
    %c0 = arith.constant 0 : index
    %c0_0 = arith.constant 0 : index
    %0 = vector.load %arg1[%c0, %c0_0] : memref<8x32xf32, #tpu.memory_space<vmem>>, vector<8x32xf32>
    %1 = arith.truncf %0 : vector<8x32xf32> to vector<8x32xbf16>
    %c0_1 = arith.constant 0 : index
    %c0_2 = arith.constant 0 : index
    %2 = vector.load %arg2[%c0_1, %c0_2] : memref<8x32xf32, #tpu.memory_space<vmem>>, vector<8x32xf32>
    %3 = arith.truncf %2 : vector<8x32xf32> to vector<8x32xbf16>
    %c0_3 = arith.constant 0 : index
    %c0_4 = arith.constant 0 : index
    %4 = vector.load %arg3[%c0_3, %c0_4] : memref<32x32xbf16, #tpu.memory_space<vmem>>, vector<32x32xbf16>
    %cst = arith.constant dense<0.000000e+00> : vector<8x32xf32>
    %5 = tpu.matmul %1, %4, %cst {dimension_numbers = #tpu.dot_dimension_numbers<[1], [0], [0], [1], [0, 0, 1, 1], [], []>} : vector<8x32xbf16>, vector<32x32xbf16>, vector<8x32xf32> -> vector<8x32xf32>
    %c0_5 = arith.constant 0 : index
    %c0_6 = arith.constant 0 : index
    %6 = vector.load %arg4[%c0_5, %c0_6] : memref<32x32xbf16, #tpu.memory_space<vmem>>, vector<32x32xbf16>
    %cst_7 = arith.constant dense<0.000000e+00> : vector<8x32xf32>
    %7 = tpu.matmul %1, %6, %cst_7 {dimension_numbers = #tpu.dot_dimension_numbers<[1], [0], [0], [1], [0, 0, 1, 1], [], []>} : vector<8x32xbf16>, vector<32x32xbf16>, vector<8x32xf32> -> vector<8x32xf32>
    %c0_8 = arith.constant 0 : index
    %c0_9 = arith.constant 0 : index
    %8 = vector.load %arg5[%c0_8, %c0_9] : memref<32x32xbf16, #tpu.memory_space<vmem>>, vector<32x32xbf16>
    %cst_10 = arith.constant dense<0.000000e+00> : vector<8x32xf32>
    %9 = tpu.matmul %1, %8, %cst_10 {dimension_numbers = #tpu.dot_dimension_numbers<[1], [0], [0], [1], [0, 0, 1, 1], [], []>} : vector<8x32xbf16>, vector<32x32xbf16>, vector<8x32xf32> -> vector<8x32xf32>
    %c0_11 = arith.constant 0 : index
    %c0_12 = arith.constant 0 : index
    %10 = vector.load %arg6[%c0_11, %c0_12] : memref<32x32xbf16, #tpu.memory_space<vmem>>, vector<32x32xbf16>
    %cst_13 = arith.constant dense<0.000000e+00> : vector<8x32xf32>
    %11 = tpu.matmul %3, %10, %cst_13 {dimension_numbers = #tpu.dot_dimension_numbers<[1], [0], [0], [1], [0, 0, 1, 1], [], []>} : vector<8x32xbf16>, vector<32x32xbf16>, vector<8x32xf32> -> vector<8x32xf32>
    %c2 = arith.constant 2 : index
    %c0_14 = arith.constant 0 : index
    %12 = vector.load %arg8[%c2, %c0_14] : memref<3x32xf32, #tpu.memory_space<vmem>>, vector<1x32xf32>
    %13 = vector.broadcast %12 : vector<1x32xf32> to vector<8x32xf32>
    %14 = arith.addf %11, %13 : vector<8x32xf32>
    %c0_15 = arith.constant 0 : index
    %c0_16 = arith.constant 0 : index
    %15 = vector.load %arg8[%c0_15, %c0_16] : memref<3x32xf32, #tpu.memory_space<vmem>>, vector<1x32xf32>
    %c1 = arith.constant 1 : index
    %c0_17 = arith.constant 0 : index
    %16 = vector.load %arg8[%c1, %c0_17] : memref<3x32xf32, #tpu.memory_space<vmem>>, vector<1x32xf32>
    %17 = vector.broadcast %15 : vector<1x32xf32> to vector<8x32xf32>
    %18 = arith.addf %5, %17 : vector<8x32xf32>
    %19 = vector.broadcast %16 : vector<1x32xf32> to vector<8x32xf32>
    %20 = arith.addf %7, %19 : vector<8x32xf32>
    %21 = tpu.concatenate %18, %20 in 1 : vector<8x32xf32>, vector<8x32xf32> -> vector<8x64xf32>
    %22 = tpu.concatenate %7, %14 in 1 : vector<8x32xf32>, vector<8x32xf32> -> vector<8x64xf32>
    %23 = vector.shape_cast %21 : vector<8x64xf32> to vector<4x2x64xf32>
    %24 = vector.shape_cast %22 : vector<8x64xf32> to vector<4x2x64xf32>
    %25 = vector.shape_cast %9 : vector<8x32xf32> to vector<4x2x32xf32>
    %26 = vector.extract_strided_slice %24 {offsets = [0, 0, 0], sizes = [4, 1, 64], strides = [1, 1, 1]} : vector<4x2x64xf32> to vector<4x1x64xf32>
    %27 = vector.broadcast %26 : vector<4x1x64xf32> to vector<4x2x64xf32>
    %28 = arith.mulf %23, %27 : vector<4x2x64xf32>
    %cst_18 = arith.constant dense<0.000000e+00> : vector<4x2xf32>
    %29 = vector.multi_reduction <add>, %28, %cst_18 [2] : vector<4x2x64xf32> to vector<4x2xf32>
    %30 = vector.shape_cast %29 : vector<4x2xf32> to vector<4x2x1xf32>
    %31 = vector.extract_strided_slice %24 {offsets = [0, 1, 0], sizes = [4, 1, 64], strides = [1, 1, 1]} : vector<4x2x64xf32> to vector<4x1x64xf32>
    %32 = vector.broadcast %31 : vector<4x1x64xf32> to vector<4x2x64xf32>
    %33 = arith.mulf %23, %32 : vector<4x2x64xf32>
    %cst_19 = arith.constant dense<0.000000e+00> : vector<4x2xf32>
    %34 = vector.multi_reduction <add>, %33, %cst_19 [2] : vector<4x2x64xf32> to vector<4x2xf32>
    %35 = vector.shape_cast %34 : vector<4x2xf32> to vector<4x2x1xf32>
    %36 = tpu.concatenate %30, %35 in 2 : vector<4x2x1xf32>, vector<4x2x1xf32> -> vector<4x2x2xf32>
    %cst_20 = arith.constant dense<0xFF800000> : vector<4x2xf32>
    %37 = vector.multi_reduction <maximumf>, %36, %cst_20 [2] : vector<4x2x2xf32> to vector<4x2xf32>
    %38 = vector.shape_cast %37 : vector<4x2xf32> to vector<4x2x1xf32>
    %39 = vector.broadcast %38 : vector<4x2x1xf32> to vector<4x2x2xf32>
    %40 = arith.subf %36, %39 : vector<4x2x2xf32>
    %41 = math.exp %40 : vector<4x2x2xf32>
    %cst_21 = arith.constant dense<0.000000e+00> : vector<4x2xf32>
    %42 = vector.multi_reduction <add>, %41, %cst_21 [2] : vector<4x2x2xf32> to vector<4x2xf32>
    %43 = vector.shape_cast %42 : vector<4x2xf32> to vector<4x2x1xf32>
    %44 = tpu.reciprocal %43 {approx = true} : vector<4x2x1xf32> -> vector<4x2x1xf32>
    %45 = vector.broadcast %44 : vector<4x2x1xf32> to vector<4x2x2xf32>
    %46 = arith.mulf %41, %45 : vector<4x2x2xf32>
    %47 = vector.extract_strided_slice %46 {offsets = [0, 0, 0], sizes = [4, 2, 1], strides = [1, 1, 1]} : vector<4x2x2xf32> to vector<4x2x1xf32>
    %48 = vector.extract_strided_slice %25 {offsets = [0, 0, 0], sizes = [4, 1, 32], strides = [1, 1, 1]} : vector<4x2x32xf32> to vector<4x1x32xf32>
    %49 = vector.broadcast %47 : vector<4x2x1xf32> to vector<4x2x32xf32>
    %50 = vector.broadcast %48 : vector<4x1x32xf32> to vector<4x2x32xf32>
    %51 = arith.mulf %49, %50 : vector<4x2x32xf32>
    %52 = vector.extract_strided_slice %46 {offsets = [0, 0, 1], sizes = [4, 2, 1], strides = [1, 1, 1]} : vector<4x2x2xf32> to vector<4x2x1xf32>
    %53 = vector.extract_strided_slice %25 {offsets = [0, 1, 0], sizes = [4, 1, 32], strides = [1, 1, 1]} : vector<4x2x32xf32> to vector<4x1x32xf32>
    %54 = vector.broadcast %52 : vector<4x2x1xf32> to vector<4x2x32xf32>
    %55 = vector.broadcast %53 : vector<4x1x32xf32> to vector<4x2x32xf32>
    %56 = arith.mulf %54, %55 : vector<4x2x32xf32>
    %57 = arith.addf %51, %56 : vector<4x2x32xf32>
    %58 = vector.shape_cast %57 : vector<4x2x32xf32> to vector<8x32xf32>
    %59 = arith.truncf %58 : vector<8x32xf32> to vector<8x32xbf16>
    %c0_22 = arith.constant 0 : index
    %c0_23 = arith.constant 0 : index
    %60 = vector.load %arg7[%c0_22, %c0_23] : memref<32x32xbf16, #tpu.memory_space<vmem>>, vector<32x32xbf16>
    %cst_24 = arith.constant dense<0.000000e+00> : vector<8x32xf32>
    %61 = tpu.matmul %59, %60, %cst_24 {dimension_numbers = #tpu.dot_dimension_numbers<[1], [0], [0], [1], [0, 0, 1, 1], [], []>} : vector<8x32xbf16>, vector<32x32xbf16>, vector<8x32xf32> -> vector<8x32xf32>
    %62 = arith.addf %0, %61 : vector<8x32xf32>
    %cst_25 = arith.constant dense<0.000000e+00> : vector<8xf32>
    %63 = vector.multi_reduction <add>, %62, %cst_25 [1] : vector<8x32xf32> to vector<8xf32>
    %64 = vector.shape_cast %63 : vector<8xf32> to vector<8x1xf32>
    %cst_26 = arith.constant 3.200000e+01 : f32
    %65 = vector.broadcast %cst_26 : f32 to vector<8x1xf32>
    %66 = arith.divf %64, %65 : vector<8x1xf32>
    %67 = vector.broadcast %66 : vector<8x1xf32> to vector<8x32xf32>
    %68 = arith.subf %62, %67 : vector<8x32xf32>
    %69 = arith.mulf %68, %68 : vector<8x32xf32>
    %cst_27 = arith.constant dense<0.000000e+00> : vector<8xf32>
    %70 = vector.multi_reduction <add>, %69, %cst_27 [1] : vector<8x32xf32> to vector<8xf32>
    %71 = vector.shape_cast %70 : vector<8xf32> to vector<8x1xf32>
    %cst_28 = arith.constant 3.200000e+01 : f32
    %72 = vector.broadcast %cst_28 : f32 to vector<8x1xf32>
    %73 = arith.divf %71, %72 : vector<8x1xf32>
    %cst_29 = arith.constant 9.99999974E-6 : f32
    %74 = vector.broadcast %cst_29 : f32 to vector<8x1xf32>
    %75 = arith.addf %73, %74 : vector<8x1xf32>
    %76 = math.rsqrt %75 : vector<8x1xf32>
    %77 = vector.broadcast %76 : vector<8x1xf32> to vector<8x32xf32>
    %78 = arith.mulf %68, %77 : vector<8x32xf32>
    %c0_30 = arith.constant 0 : index
    %c0_31 = arith.constant 0 : index
    %79 = vector.load %arg9[%c0_30, %c0_31] : memref<2x32xf32, #tpu.memory_space<vmem>>, vector<1x32xf32>
    %80 = vector.broadcast %79 : vector<1x32xf32> to vector<8x32xf32>
    %81 = arith.mulf %78, %80 : vector<8x32xf32>
    %c1_32 = arith.constant 1 : index
    %c0_33 = arith.constant 0 : index
    %82 = vector.load %arg9[%c1_32, %c0_33] : memref<2x32xf32, #tpu.memory_space<vmem>>, vector<1x32xf32>
    %83 = vector.broadcast %82 : vector<1x32xf32> to vector<8x32xf32>
    %84 = arith.addf %81, %83 : vector<8x32xf32>
    %c0_34 = arith.constant 0 : index
    %c0_35 = arith.constant 0 : index
    %85 = vector.load %arg10[%c0_34, %c0_35] : memref<8x32xf32, #tpu.memory_space<vmem>>, vector<8x32xf32>
    tpu.vector_store %arg10[%c0_34, %c0_35], %84 {strides = array<i32>} : memref<8x32xf32, #tpu.memory_space<vmem>>, vector<8x32xf32>,
    return
  }
  func.func @transform_0(%arg0: i32) -> (i32, i32) {
    %c0_i32 = arith.constant 0 : i32
    %c0_i32_0 = arith.constant 0 : i32
    return %arg0, %c0_i32 : i32, i32
  }
  func.func @transform_1(%arg0: i32) -> (i32, i32) {
    %c0_i32 = arith.constant 0 : i32
    %c0_i32_0 = arith.constant 0 : i32
    return %arg0, %c0_i32 : i32, i32
  }
  func.func @transform_2(%arg0: i32) -> (i32, i32) {
    %c0_i32 = arith.constant 0 : i32
    %c0_i32_0 = arith.constant 0 : i32
    %c0_i32_1 = arith.constant 0 : i32
    return %c0_i32, %c0_i32_0 : i32, i32
  }
  func.func @transform_3(%arg0: i32) -> (i32, i32) {
    %c0_i32 = arith.constant 0 : i32
    %c0_i32_0 = arith.constant 0 : i32
    %c0_i32_1 = arith.constant 0 : i32
    return %c0_i32, %c0_i32_0 : i32, i32
  }
  func.func @transform_4(%arg0: i32) -> (i32, i32) {
    %c0_i32 = arith.constant 0 : i32
    %c0_i32_0 = arith.constant 0 : i32
    %c0_i32_1 = arith.constant 0 : i32
    return %c0_i32, %c0_i32_0 : i32, i32
  }
  func.func @transform_5(%arg0: i32) -> (i32, i32) {
    %c0_i32 = arith.constant 0 : i32
    %c0_i32_0 = arith.constant 0 : i32
    %c0_i32_1 = arith.constant 0 : i32
    return %c0_i32, %c0_i32_0 : i32, i32
  }
  func.func @transform_6(%arg0: i32) -> (i32, i32) {
    %c0_i32 = arith.constant 0 : i32
    %c0_i32_0 = arith.constant 0 : i32
    %c0_i32_1 = arith.constant 0 : i32
    return %c0_i32, %c0_i32_0 : i32, i32
  }
  func.func @transform_7(%arg0: i32) -> (i32, i32) {
    %c0_i32 = arith.constant 0 : i32
    %c0_i32_0 = arith.constant 0 : i32
    %c0_i32_1 = arith.constant 0 : i32
    return %c0_i32, %c0_i32_0 : i32, i32
  }
  func.func @transform_8(%arg0: i32) -> (i32, i32) {
    %c0_i32 = arith.constant 0 : i32
    %c0_i32_0 = arith.constant 0 : i32
    %c0_i32_1 = arith.constant 0 : i32
    return %c0_i32, %c0_i32_0 : i32, i32
  }
  func.func @transform_9(%arg0: i32) -> (i32, i32) {
    %c0_i32 = arith.constant 0 : i32
    %c0_i32_0 = arith.constant 0 : i32
    return %arg0, %c0_i32 : i32, i32
  }
}

</mosaic_0001>

<bundles_post_ra>
// kernel: tpu_custom_call.1
= control target key start
LH: loop header
LB: loop body
LE: loop exit
PB: predicated region body
PF: predicated region fallthrough
CT: control target
= control target key end

     0   :  { %s2226_s0 = inlined_call_operand.hbm [shape: f32[16,32], index: 0, kind: input, shape index: {}]   ;;  %s2227_s1 = inlined_call_operand.hbm [shape: f32[16,32], index: 1, kind: input, shape index: {}]   ;;  %s2228_s2 = inlined_call_operand.hbm [shape: bf16[32,32], index: 2, kind: input, shape index: {}]   ;;  %s2229_s3 = inlined_call_operand.hbm [shape: bf16[32,32], index: 3, kind: input, shape index: {}]   ;;  %s2230_s4 = inlined_call_operand.hbm [shape: bf16[32,32], index: 4, kind: input, shape index: {}]   ;;  %s2231_s5 = inlined_call_operand.vmem [shape: bf16[32,32], index: 5, kind: input, shape index: {}]   ;;  %s2232_s6 = inlined_call_operand.hbm [shape: bf16[32,32], index: 6, kind: input, shape index: {}]   ;;  %s2233_s7 = inlined_call_operand.vmem [shape: f32[3,32], index: 7, kind: input, shape index: {}]   ;;  %s2234_s8 = inlined_call_operand.vmem [shape: f32[2,32], index: 8, kind: input, shape index: {}]   ;;  %s2235_s9 = inlined_call_operand.hbm [shape: f32[16,32], index: 9, kind: output, shape index: {}]  }
   0x1   :  { %2241 = sst [smem:[#allocation21_spill]] %s2228_s2 }
   0x2   :  { %2242 = sst [smem:[#allocation22_spill]] %s2229_s3 }
   0x3   :  { %2243 = sst [smem:[#allocation23_spill]] %s2230_s4 }
   0x4   :  { %2244 = sst [smem:[#allocation24_spill]] %s2232_s6 }
   0x5   :  { %2245 = sst [smem:[#allocation25_spill]] %s2235_s9 }
   0x6   :  { %14 = vsyncpa [#allocation3], 0 }
   0x7   :  { %16 = vsyncpa [#allocation3 + $0x1], 0 }
   0x8   :  { %17 = vsyncpa [#allocation6], 0 }
   0x9   :  { %19 = vsyncpa [#allocation6 + $0x1], 0 }
   0xa   :  { %20 = vsyncpa [#allocation9], 0 }
   0xb   :  { %21 = vsyncpa [#allocation12], 0 }
   0xc   :  { %22 = vsyncpa [#allocation4], 0 }
   0xd   :  { %24 = vsyncpa [#allocation4 + $0x1], 0  ;;  %s1776_s30 = smov 0   ;;  %s1778_s10 = smov 0  }
   0xe   :  { %s1780_s11 = smov 0   ;;  %s1782_s12 = smov 0  }
   0xf LB: > { %s1711_s13 = smov [#allocation7]   ;;  %s1797_s15 = sadd.s32 4294967295, %s1709_s12   ;;  %s1709_s12 = sphi %s1782_s12, %s2276_s12   ;;  %s1705_s11 = sphi %s1780_s11, %s2275_s11   ;;  %s1701_s10 = sphi %s1778_s10, %s2274_s10   ;;  %s1697_s30 = sphi %s1776_s30, %s2273_s30  }
  0x10   : > { %s272_s14 = sshll.u32 %s1711_s13, 4  ;;  %p1222_p0 = scmp.ge.s32.totalorder %s1709_s12, 1  ;;  %s1802_s14 = int_to_ptr.vmem [resolvable:$true] %s272_s14 }
  0x11   : > { %p2237_p1 = scmp.eq.s32.totalorder %s1797_s15, 0  ;;  %p260_p2 = scmp.lt.s32.totalorder %s1709_s12, 3 }
  0x12   : > { %s1712_s17 = smov [#allocation8]   ;;  %s1713_s20 = smov [#allocation10]  }
  0x13   : > { %p1804_p3 = pnand %p1222_p0, %p260_p2  ;;  %s285_s18 = sshll.u32 %s1712_s17, 4  ;;  %s1817_s18 = int_to_ptr.vmem [resolvable:$true] %s285_s18 }
  0x14   : > { %s298_s21 = sshll.u32 %s1713_s20, 4  ;;  %s2248_s2 = sld [smem:[#allocation21_spill]]  ;;  %s1819_s21 = int_to_ptr.vmem [resolvable:$true] %s298_s21 }
  0x15   : > { %s2246_s16 = scalar_select %p1804_p3, 1, 0 }
  0x16   : > { %p1341_p5 = pneg %p1804_p3 }
  0x18   : > { %p1813_p6 = pnand %p1341_p5, %p2237_p1 }
  0x1a   : > { %s1455_s24 = scalar_lea.hbm %s2248_s2, 256  ;;  %p1829_p8 = pneg %p1813_p6 }
  0x1b   : > { %p1456_p7 = scmp.ne.s32.totalorder %s2248_s2, %s1455_s24  ;;  %p1462_p11 = scmp.lt.u32.totalorder %s1455_s24, %s2248_s2 }
  0x1d   : > { %p1458_p9 = pnand %p1829_p8, %p1456_p7 }
  0x1f   : > { %p1459_p10 = pneg %p1458_p9 }
  0x21   : > { %p1464_p12 = pnand %p1462_p11, %p1459_p10 }
  0x23   : > { %1467 = shalt.err (!%p1464_p12)
}
  0x24   : > { %s1468_s13 = scalar_lea.vmem %s1802_s14, 256  ;;  %p1476_p5 = scmp.lt.s32.totalorder %s1802_s14, %s1802_s14 }
  0x25   : > { %p1469_p13 = scmp.ne.s32.totalorder %s1802_s14, %s1468_s13  ;;  %p1477_p4 = scmp.lt.s32.totalorder %s1468_s13, %s1468_s13 }
  0x27   : > { %p1471_p0 = pnand %p1469_p13, %p1829_p8  ;;  %p1478_p7 = por %p1477_p4, %p1476_p5 }
  0x29   : > { %p1472_p2 = pneg %p1471_p0 }
  0x2b   : > { %p1479_p9 = pnand %p1478_p7, %p1472_p2 }
  0x2d   : > { %1482 = shalt.err (!%p1479_p9)
}
  0x2e   : > { %s1714_s17 = smov 64   ;;  %s1715_s20 = smov 4  }
  0x2f   : > { %1344 = dma.hbm_to_vmem [thread:$0]  (!%p1813_p6), %s2248_s2, 256, %s1802_s14, [#allocation6], %s1714_s17, %s1714_s17, %s1715_s20  }
  0x30   : > { %s2250_s3 = sld [smem:[#allocation22_spill]] }
  0x36   : > { %s1483_s26 = scalar_lea.hbm %s2250_s3, 256 }
  0x37   : > { %p1484_p4 = scmp.ne.s32.totalorder %s2250_s3, %s1483_s26  ;;  %p1490_p12 = scmp.lt.u32.totalorder %s1483_s26, %s2250_s3 }
  0x39   : > { %p1486_p10 = pnand %p1484_p4, %p1829_p8 }
  0x3b   : > { %p1487_p11 = pneg %p1486_p10 }
  0x3d   : > { %p1492_p13 = pnand %p1490_p12, %p1487_p11 }
  0x3f   : > { %1495 = shalt.err (!%p1492_p13)
}
  0x40   : > { %s1496_s14 = scalar_lea.vmem %s1817_s18, 256  ;;  %p1504_p7 = scmp.lt.s32.totalorder %s1817_s18, %s1817_s18 }
  0x41   : > { %p1497_p0 = scmp.ne.s32.totalorder %s1817_s18, %s1496_s14  ;;  %p1505_p9 = scmp.lt.s32.totalorder %s1496_s14, %s1496_s14 }
  0x43   : > { %p1499_p2 = pnand %p1497_p0, %p1829_p8  ;;  %p1506_p4 = por %p1505_p9, %p1504_p7 }
  0x45   : > { %p1500_p5 = pneg %p1499_p2 }
  0x47   : > { %p1507_p10 = pnand %p1506_p4, %p1500_p5 }
  0x49   : > { %1510 = shalt.err (!%p1507_p10)
}
  0x4a   : > { %1347 = dma.hbm_to_vmem [thread:$0]  (!%p1813_p6), %s2250_s3, 256, %s1817_s18, [#allocation9], %s1714_s17, %s1714_s17, %s1715_s20  }
  0x4b   : > { %s2251_s4 = sld [smem:[#allocation23_spill]] }
  0x51   : > { %s1511_s25 = scalar_lea.hbm %s2251_s4, 256 }
  0x52   : > { %p1512_p11 = scmp.ne.s32.totalorder %s2251_s4, %s1511_s25  ;;  %p1518_p0 = scmp.lt.u32.totalorder %s1511_s25, %s2251_s4 }
  0x54   : > { %p1514_p12 = pnand %p1512_p11, %p1829_p8 }
  0x56   : > { %p1515_p13 = pneg %p1514_p12 }
  0x58   : > { %p1520_p2 = pnand %p1518_p0, %p1515_p13 }
  0x5a   : > { %1523 = shalt.err (!%p1520_p2)
}
  0x5b   : > { %s1524_s18 = scalar_lea.vmem %s1819_s21, 256  ;;  %p1532_p4 = scmp.lt.s32.totalorder %s1819_s21, %s1819_s21 }
  0x5c   : > { %p1525_p5 = scmp.ne.s32.totalorder %s1819_s21, %s1524_s18  ;;  %p1533_p10 = scmp.lt.s32.totalorder %s1524_s18, %s1524_s18 }
  0x5e   : > { %p1527_p7 = pnand %p1525_p5, %p1829_p8  ;;  %p1534_p11 = por %p1533_p10, %p1532_p4 }
  0x60   : > { %p1528_p9 = pneg %p1527_p7 }
  0x62   : > { %p1535_p12 = pnand %p1534_p11, %p1528_p9 }
  0x64   : > { %1538 = shalt.err (!%p1535_p12)
}
  0x65   : > { %1350 = dma.hbm_to_vmem [thread:$0]  (!%p1813_p6), %s2251_s4, 256, %s1819_s21, [#allocation9], %s1714_s17, %s1714_s17, %s1715_s20  }
  0x66   : > { %s1716_s22 = smov [#allocation11]   ;;  %s2252_s6 = sld [smem:[#allocation24_spill]] }
  0x67   : > { %s314_s23 = sshll.u32 %s1716_s22, 4  ;;  %s315_s23 = int_to_ptr.vmem [resolvable:$true] %s314_s23 }
  0x6c   : > { %s1539_s26 = scalar_lea.hbm %s2252_s6, 256 }
  0x6d   : > { %p1540_p13 = scmp.ne.s32.totalorder %s2252_s6, %s1539_s26  ;;  %p1546_p5 = scmp.lt.u32.totalorder %s1539_s26, %s2252_s6 }
  0x6f   : > { %p1542_p0 = pnand %p1540_p13, %p1829_p8 }
  0x71   : > { %p1543_p2 = pneg %p1542_p0 }
  0x73   : > { %p1548_p7 = pnand %p1546_p5, %p1543_p2 }
  0x75   : > { %1551 = shalt.err (!%p1548_p7)
}
  0x76   : > { %s1552_s21 = scalar_lea.vmem %s315_s23, 256  ;;  %p1560_p11 = scmp.lt.s32.totalorder %s315_s23, %s315_s23 }
  0x77   : > { %p1553_p9 = scmp.ne.s32.totalorder %s315_s23, %s1552_s21  ;;  %p1561_p12 = scmp.lt.s32.totalorder %s1552_s21, %s1552_s21 }
  0x79   : > { %p1555_p4 = pnand %p1553_p9, %p1829_p8  ;;  %p1562_p1 = por %p1561_p12, %p1560_p11 }
  0x7b   : > { %p1556_p10 = pneg %p1555_p4 }
  0x7d   : > { %p1563_p3 = pnand %p1562_p1, %p1556_p10 }
  0x7f   : > { %1566 = shalt.err (!%p1563_p3)
}
  0x80   : > { %1353 = dma.hbm_to_vmem [thread:$0]  (!%p1813_p6), %s2252_s6, 256, %s315_s23, [#allocation12], %s1714_s17, %s1714_s17, %s1715_s20  }
  0x81   : > { %s1221_s19 = sadd.s32 4294967294, %s1709_s12   ;;  %s1928_s27 = sadd.s32 1, %s1709_s12  }
  0x82   : > { %s34_s22 = ssub.s32 %s1709_s12, %s1928_s27  ;;  %s37_s24 = sadd.s32 1, %s1705_s11 }
  0x83   : > { %p35_p1 = scmp.eq.s32.totalorder %s34_s22, 0  ;;  %p44_p3 = scmp.ne.s32.totalorder %s1705_s11, %s1701_s10 }
  0x84   : > { %p45_p8 = scmp.eq.s32.totalorder %s1709_s12, 0  ;;  %p50_p13 = scmp.ne.s32.totalorder %s1701_s10, %s1697_s30 }
  0x85   : > { %s1939_s25 = scalar_select %p35_p1, %s1705_s11, %s37_s24  }
  0x86   : > { %p1941_p0 = por %p45_p8, %p44_p3  ;;  %p2255_p2 = scmp.eq.s32.totalorder %s1797_s15, 0 }
  0x87   : > { %2253 = sst [smem:[#allocation20_spill]] %s1939_s25  ;;  %p247_p5 = scmp.eq.s32.totalorder %s1797_s15, 1 }
  0x88   : > { %p1947_p6 = por %p2255_p2, %p50_p13  ;;  %p253_p7 = scmp.eq.s32.totalorder %s1221_s19, 1 }
  0x89   : > { %p1369_p9 = scmp.lt.s32.totalorder %s1709_s12, 2  ;;  %s334_s20 = sand.u32 1, %s1705_s11  }
  0x8a   : > { %s2256_s17 = scalar_select %p1947_p6, 1, 0 }
  0x8b   : > { %p1954_p4 = por %p247_p5, %p44_p3  ;;  %p1958_p10 = por %p253_p7, %p50_p13 }
  0x8c   : > { %s1962_s29 = sshll.u32 %s334_s20, 3  ;;  %s1229_s13 = sshll.u32 %s1709_s12, 7 }
  0x8d   : > { %s2257_s23 = scalar_select %p1954_p4, 1, 0 }
  0x8e   : > { %s2258_s28 = scalar_select %p1958_p10, 1, 0 }
  0x8f   : > { %s1968_s14 = scalar_lea.hbm %s2226_s0, %s1229_s13  ;;  %s338_s9 = scalar_lea.vmem [#allocation2], %s1962_s29 }
  0x90   : > { %s345_s19 = sshll.u32 %s338_s9, 4  ;;  %p1975_p11 = pnand %p1369_p9, %p1941_p0  ;;  %s1971_s19 = int_to_ptr.vmem [resolvable:$true] %s345_s19 }
  0x91   : > { %s1982_s18 = scalar_lea.hbm %s2227_s1, %s1229_s13  ;;  %s352_s21 = sand.u32 1, %s1709_s12  }
  0x92   : > { %s335_s3 = scalar_lea.sflag [#allocation3], %s334_s20  ;;  %s1567_s4 = scalar_lea.hbm %s1968_s14, 128 }
  0x93   : > { %p1568_p12 = scmp.ne.s32.totalorder %s1968_s14, %s1567_s4  ;;  %p1569_p1 = pneg %p1975_p11 }
  0x94   : > { %s1572_s6 = scalar_lea.hbm %s2226_s0, 256  ;;  %p1573_p13 = scmp.lt.u32.totalorder %s1968_s14, %s2226_s0 }
  0x95   : > { %p1570_p3 = pnand %p1569_p1, %p1568_p12  ;;  %p1574_p0 = scmp.lt.u32.totalorder %s1572_s6, %s1567_s4 }
  0x96   : > { %p1576_p5 = scmp.lt.u32.totalorder %s1567_s4, %s1968_s14 }
  0x97   : > { %p1571_p8 = pneg %p1570_p3  ;;  %p1575_p2 = por %p1574_p0, %p1573_p13 }
  0x99   : > { %p1577_p7 = por %p1576_p5, %p1575_p2 }
  0x9b   : > { %p1578_p9 = pnand %p1577_p7, %p1571_p8 }
  0x9d   : > { %1581 = shalt.err (!%p1578_p9)
}
  0x9e   : > { %s1582_s20 = scalar_lea.vmem %s1971_s19, 128  ;;  %s1717_s13 = smov [#allocation2]  }
  0x9f   : > { %p1583_p12 = scmp.ne.s32.totalorder %s1971_s19, %s1582_s20  ;;  %s1587_s24 = sshll.u32 %s1717_s13, 4  ;;  %s1588_s24 = int_to_ptr.vmem [resolvable:$false] %s1587_s24 }
  0xa0   : > { %s1589_s25 = scalar_lea.vmem %s1588_s24, 256  ;;  %p1590_p4 = scmp.lt.s32.totalorder %s1971_s19, %s1588_s24 }
  0xa1   : > { %p1585_p3 = pnand %p1583_p12, %p1569_p1  ;;  %p1591_p13 = scmp.lt.s32.totalorder %s1589_s25, %s1582_s20 }
  0xa3   : > { %p1586_p10 = pneg %p1585_p3  ;;  %p1592_p0 = por %p1591_p13, %p1590_p4 }
  0xa5   : > { %p1593_p2 = pnand %p1592_p0, %p1586_p10 }
  0xa7   : > { %1596 = shalt.err (!%p1593_p2)
}
  0xa8   : > { %1357 = dma.hbm_to_vmem [thread:$0]  (!%p1975_p11), %s1968_s14, 128, %s1971_s19, %s335_s3  }
  0xa9   : > { %s356_s4 = scalar_lea.vmem [#allocation5], %s1962_s29  ;;  %s353_s26 = scalar_lea.sflag [#allocation6], %s352_s21 }
  0xaa   : > { %s363_s6 = sshll.u32 %s356_s4, 4  ;;  %s1597_s9 = scalar_lea.hbm %s1982_s18, 128  ;;  %s364_s6 = int_to_ptr.vmem [resolvable:$true] %s363_s6 }
  0xab   : > { %p1598_p4 = scmp.ne.s32.totalorder %s1982_s18, %s1597_s9  ;;  %s1602_s13 = scalar_lea.hbm %s2227_s1, 256 }
  0xac   : > { %p1603_p5 = scmp.lt.u32.totalorder %s1982_s18, %s2227_s1  ;;  %p1604_p7 = scmp.lt.u32.totalorder %s1602_s13, %s1597_s9 }
  0xad   : > { %p1600_p10 = pnand %p1598_p4, %p1569_p1  ;;  %p1606_p12 = scmp.lt.u32.totalorder %s1597_s9, %s1982_s18 }
  0xae   : > { %p1605_p9 = por %p1604_p7, %p1603_p5 }
  0xaf   : > { %p1601_p8 = pneg %p1600_p10 }
  0xb0   : > { %p1607_p3 = por %p1606_p12, %p1605_p9 }
  0xb2   : > { %p1608_p13 = pnand %p1607_p3, %p1601_p8 }
  0xb4   : > { %1611 = shalt.err (!%p1608_p13)
}
  0xb5   : > { %s1612_s3 = scalar_lea.vmem %s364_s6, 128  ;;  %s1718_s29 = smov [#allocation5]  }
  0xb6   : > { %p1613_p0 = scmp.ne.s32.totalorder %s364_s6, %s1612_s3  ;;  %s1617_s14 = sshll.u32 %s1718_s29, 4  ;;  %s1618_s14 = int_to_ptr.vmem [resolvable:$false] %s1617_s14 }
  0xb7   : > { %s1619_s19 = scalar_lea.vmem %s1618_s14, 256  ;;  %p1620_p10 = scmp.lt.s32.totalorder %s364_s6, %s1618_s14 }
  0xb8   : > { %p1615_p2 = pnand %p1613_p0, %p1569_p1  ;;  %p1621_p6 = scmp.lt.s32.totalorder %s1619_s19, %s1612_s3 }
  0xba   : > { %p1616_p4 = pneg %p1615_p2  ;;  %p1622_p5 = por %p1621_p6, %p1620_p10 }
  0xbc   : > { %p1623_p7 = pnand %p1622_p5, %p1616_p4 }
  0xbe   : > { %1626 = shalt.err (!%p1623_p7)
}
  0xbf   : > { %1360 = dma.hbm_to_vmem [thread:$0]  (!%p1975_p11), %s1982_s18, 128, %s364_s6, %s353_s26  }
  0xc0   : > { %p2260_p8 = scmp.ne.s32.totalorder %s2246_s16, 0 }
  0xc1   : > { %s2035_s21 = sand.u32 (!%p2260_p8), 1, %s1701_s10   ;;  %p2261_p6 = scmp.ne.s32.totalorder (!%p2260_p8), %s2256_s17, 0 }
  0xc2   : > { %372 = sbr.rel (%p2260_p8) target bundleno = 1747 (0x6d3), region = 56  ;;  %s2038_s4 = sshll.u32 (!%p2260_p8), %s2035_s21, 3 }
  0xc3   : > { %s375_s9 = scalar_lea.sflag (!%p2260_p8), [#allocation3], %s2035_s21  ;;  %s378_s2 = scalar_lea.vmem (!%p2260_p8), [#allocation2], %s2038_s4 }
  0xc9   : > { %1672 = dma.done.wait (%p2261_p6), %s375_s9, 128  }
  0xca   : > { %1674 = vsyncadd (%p2261_p6), %s375_s9, 4294967168  ;;  %s383_s16 = sand.u32 1, %s1797_s15   ;;  %s387_s18 = scalar_lea.vmem [#allocation5], %s2038_s4 }
  0xcb   : > { %s384_s22 = scalar_lea.sflag [#allocation6], %s383_s16 }
  0xcc   : > { %1676 = dma.done.wait (%p2261_p6), %s384_s22, 128  }
  0xcd   : > { %1678 = vsyncadd (%p2261_p6), %s384_s22, 4294967168  ;;  %p2262_p11 = scmp.eq.s32.totalorder %s1797_s15, 0 }
  0xcf   : > { %1680 = dma.done.wait (%p2262_p11), [#allocation6], 256   ;;  %p2263_p1 = pmov %p2262_p11 }
  0xd1   : > { %1682 = vsyncadd (%p2263_p1), [#allocation6], 4294967040  ;;  %p2264_p9 = pmov %p2263_p1 }
  0xd2   : > { %p2265_p12 = pmov %p2263_p1 }
  0xd3   : > { %1684 = dma.done.wait (%p2264_p9), [#allocation9], 512  }
  0xd4   : > { %1686 = vsyncadd (%p2265_p12), [#allocation9], 4294966784  ;;  %p2266_p3 = pmov %p2263_p1 }
  0xd5   : > { %p2267_p13 = pmov %p2263_p1 }
  0xd6   : > { %1688 = dma.done.wait (%p2266_p3), [#allocation12], 256  }
  0xd7   : > { %1690 = vsyncadd (%p2267_p13), [#allocation12], 4294967040  ;;  %v1719_v0 = vmov 0.0   ;;  %vm1720_vm0 = vmmov 0   ;;  %v1427_v1 = vld [vmem:[#allocation8] sm:$0xff]   ;;  %v1428_v2 = vld [vmem:[#allocation8 + $0x8] sm:$0xff]   ;;  %v710_v35 = vlaneseq }
  0xd8   : > { %1279 = vmatprep.subr.bf16.mxu0 %v1719_v0  ;;  %1283 = vmatprep.mubr.msk.bf16.mxu0 %vm1720_vm0, %v1719_v0  ;;  %v2070_v3 = vld [vmem:[%s378_s2] sm:$0xff]  ;;  %vm468_vm1 = vcmask 261120   ;;  %v446_v9 = vld [vmem:[%s387_s18] sm:$0xff]  ;;  %s1721_s29 = smov 32   ;;  %v1722_v33 = vmov 1983009808  }
  0xd9   : > { %1287 = vmatprep.subr.bf16.mxu1 %v1719_v0  ;;  %1291 = vmatprep.mubr.msk.bf16.mxu1 %vm1720_vm0, %v1719_v0  ;;  %v445_v4 = vpack.c.bf16 %v2070_v3, %v2070_v3  ;;  %v1431_v5 = vld [vmem:[#allocation10] sm:$0xff]   ;;  %v1432_v7 = vld [vmem:[#allocation10 + $0x8] sm:$0xff]   ;;  %v447_v11 = vpack.c.bf16 %v446_v9, %v446_v9  ;;  %v708_v34 = vunpack.c.l.s4 %v1722_v33  ;;  %v711_v37 = vshrl.u32 %v710_v35, 7  ;;  %s1261_s18 = sshll.u32 %s1797_s15, 7  ;;  %s442_s17 = scalar_lea.vmem [#allocation13], %s2038_s4 }
  0xda   : > { %1280 = vmatpush3.bf16.msra.mxu0 %v1427_v1  ;;  %v1429_v6 = vld [vmem:[%s2231_s5] sm:$0xff]   ;;  %1288 = vmatpush3.bf16.msra.mxu1 %v1431_v5  ;;  %v1430_v8 = vld [vmem:[%s2231_s5 + $0x8] sm:$0xff]   ;;  %vm791_vm2 = vcmask 517120   ;;  %vm836_vm3 = vcmask 7168   ;;  %vm841_vm4 = vcmask 9216   ;;  %s1090_s6 = sshll.u32 %s442_s17, 4  ;;  %s2183_s6 = int_to_ptr.vmem [resolvable:$true] %s1090_s6 }
  0xdb   : > { %1281 = vmatprep.subr.bf16.mxu0 %v1719_v0  ;;  %1289 = vmatprep.subr.bf16.mxu1 %v1719_v0  ;;  %v1433_v10 = vld [vmem:[#allocation7] sm:$0xff]   ;;  %v1434_v12 = vld [vmem:[#allocation7 + $0x8] sm:$0xff]   ;;  %v709_v36 = vunpack.c.0.s8 %v708_v34  ;;  %v2115_v47 = vsub.s32 0, %v711_v37  ;;  %v2117_v49 = vsub.s32 1, %v711_v37  ;;  %s2268_s13 = sld [smem:[#allocation25_spill]]  ;;  %s1077_s25 = scalar_lea.sflag [#allocation4], %s2035_s21 }
  0xdc   : > { %v1246_v18 = vld [vmem:[%s2233_s7 + $0x2] ss:$0 sm:$0xff]  ;;  %v1254_v25 = vld [vmem:[%s2233_s7 + $0x1] ss:$0 sm:$0xff]  ;;  %v1250_v38 = vld [vmem:[%s2233_s7] ss:$0 sm:$0xff] }
  0xdd   : > { %v2110_v39 = vsub.s32 %v709_v36, %v711_v37  ;;  %s1627_s3 = scalar_lea.vmem %s2183_s6, 128  ;;  %p2269_p2 = scmp.ne.s32.totalorder %s2257_s23, 0 }
  0xde   : > { %1282 = vmatpush3.bf16.msra.mxu0 %v1428_v2  ;;  %1290 = vmatpush3.bf16.msra.mxu1 %v1432_v7  ;;  %p1628_p0 = scmp.ne.s32.totalorder %s2183_s6, %s1627_s3  ;;  %s1725_s15 = smov [#allocation13]  }
  0xdf   : > { %1295 = vmatprep.subr.bf16.mxu0 %v1719_v0  ;;  %1303 = vmatprep.subr.bf16.mxu1 %v1719_v0  ;;  %s1631_s4 = sshll.u32 %s1725_s15, 4  ;;  %s1632_s4 = int_to_ptr.vmem [resolvable:$false] %s1631_s4 }
  0xe0   : > { %p1629_p4 = pnand %p1628_p0, %p2269_p2  ;;  %p1634_p5 = scmp.lt.s32.totalorder %s2183_s6, %s1632_s4 }
  0xe1   : > { %1284 = vmatmul.mubr.msk.bf16.vlgmr.msra.gmra.mrb[0].mxu0 %vm468_vm1, %v445_v4  ;;  %1292 = vmatmul.mubr.msk.bf16.vlgmr.msra.gmra.mrb[0].mxu1 %vm468_vm1, %v445_v4  ;;  %s2181_s24 = scalar_lea.hbm %s2268_s13, %s1261_s18 }
  0xe2   : > { %1296 = vmatpush3.bf16.msra.mxu0 %v1429_v6  ;;  %1299 = vmatprep.mubr.msk.bf16.mxu0 %vm1720_vm0, %v1719_v0  ;;  %p1630_p10 = pneg %p1629_p4 }
  0xe3   : > { %1297 = vmatprep.subr.bf16.mxu0 %v1719_v0  ;;  %1304 = vmatpush3.bf16.msra.mxu1 %v1433_v10 }
  0xe4   : > { %1307 = vmatprep.mubr.msk.bf16.mxu1 %vm1720_vm0, %v1719_v0  ;;  %1305 = vmatprep.subr.bf16.mxu1 %v1719_v0 }
  0xe6   : > { %1298 = vmatpush3.bf16.msra.mxu0 %v1430_v8 }
  0xe7   : > { %1311 = vmatprep.subr.bf16.mxu0 %v1719_v0  ;;  %1306 = vmatpush3.bf16.msra.mxu1 %v1434_v12 }
  0xe9   : > { %1300 = vmatmul.mubr.msk.bf16.vlgmr.msra.gmra.mrb[4].mxu0 %vm468_vm1, %v447_v11 }
  0xea   : > { %1315 = vmatprep.mubr.msk.bf16.mxu0 %vm1720_vm0, %v1719_v0  ;;  %1308 = vmatmul.mubr.msk.bf16.vlgmr.msra.gmra.mrb[4].mxu1 %vm468_vm1, %v445_v4 }
 0x1b4   : > { %v506_v13 = vpop.f32.mrb[0].mxu0  ;;  %v2099_v17 = vpop.f32.mrb[0].mxu1 }
 0x1b5   : > { %v1285_v14 = vpop.f32.mrb[1].mxu0  ;;  %v1293_v19 = vpop.f32.mrb[1].mxu1  ;;  %v694_v28 = vadd.f32 %v1254_v25, %v506_v13 }
 0x1b6   : > { %v509_v15 = vpop.f32.mrb[2].mxu0  ;;  %v565_v20 = vpop.f32.mrb[2].mxu1 }
 0x1b7   : > { %v1286_v16 = vpop.f32.mrb[3].mxu0  ;;  %v1294_v22 = vpop.f32.mrb[3].mxu1 }
 0x1bc   : > { %v626_v21 = vpop.f32.mrb[4].mxu0 }
 0x1bd   : > { %v627_v23 = vadd.f32 %v1246_v18, %v626_v21  ;;  %v1301_v24 = vpop.f32.mrb[5].mxu0  ;;  %v684_v29 = vpop.f32.mrb[4].mxu1 }
 0x1be   : > { %v629_v26 = vpop.f32.mrb[6].mxu0  ;;  %v1309_v30 = vpop.f32.mrb[5].mxu1  ;;  %v685_v41 = vadd.f32 %v1250_v38, %v684_v29 }
 0x1bf   : > { %701 = vrot.lane.b32.xlu0 %v627_v23, %s1721_s29  ;;  %v1302_v27 = vpop.f32.mrb[7].mxu0  ;;  %v687_v31 = vpop.f32.mrb[6].mxu1 }
 0x1c0   : > { %v1310_v32 = vpop.f32.mrb[7].mxu1 }
 0x1c3   : > { %696 = vrot.lane.b32.xlu0 %v694_v28, %s1721_s29  ;;  %s1633_s29 = scalar_lea.vmem %s1632_s4, 256 }
 0x1c4   : > { %p1635_p7 = scmp.lt.s32.totalorder %s1633_s29, %s1627_s3 }
 0x1c6   : > { %p1636_p8 = por %p1635_p7, %p1634_p5 }
 0x1c8   : > { %p1637_p6 = pnand %p1636_p8, %p1630_p10 }
 0x231   : > { %v702_v40 = vpop.permute.xlu0 %701 }
 0x232   : > { %v704_v42 = vsel %vm468_vm1, %v506_v13, %v702_v40 }
 0x233   : > { %v728_v43 = vcombine.high %v704_v42, %v704_v42  ;;  %v735_v44 = vrot.slane %v704_v42, %v2110_v39 }
 0x235   : > { %v742_v45 = vrot.slane %v728_v43, %v2110_v39  ;;  %v697_v46 = vpop.permute.xlu0 %696  ;;  %v743_v48 = vcombine.high %v735_v44, %v735_v44  ;;  %v774_v53 = vrot.slane %v735_v44, %v2115_v47  ;;  %v807_v54 = vrot.slane %v735_v44, %v2117_v49 }
 0x236   : > { %v699_v50 = vsel %vm468_vm1, %v685_v41, %v697_v46 }
 0x237   : > { %v706_v51 = vcombine.high %v699_v50, %v699_v50  ;;  %v713_v52 = vrot.slane %v699_v50, %v2110_v39  ;;  %v782_v55 = vrot.slane %v742_v45, %v2115_v47  ;;  %v778_v56 = vrot.slane %v743_v48, %v2115_v47 }
 0x238   : > { %v744_v57 = vcombine.high %v742_v45, %v742_v45  ;;  %v811_v62 = vrot.slane %v743_v48, %v2117_v49  ;;  %v815_v63 = vrot.slane %v742_v45, %v2117_v49 }
 0x239   : > { %v720_v58 = vrot.slane %v706_v51, %v2110_v39  ;;  %v787_v59 = vmul.f32 %v774_v53, %v713_v52  ;;  %v721_v60 = vcombine.high %v713_v52, %v713_v52  ;;  %v820_v61 = vmul.f32 %v807_v54, %v713_v52 }
 0x23a   : > { %v786_v5 = vrot.slane %v744_v57, %v2115_v47  ;;  %v819_v9 = vrot.slane %v744_v57, %v2117_v49 }
 0x23b   : > { %v792_v1 = vsel %vm791_vm2, %v787_v59, 0.0  ;;  %v789_v2 = vmul.f32 %v782_v55, %v720_v58  ;;  %v788_v4 = vmul.f32 %v778_v56, %v721_v60  ;;  %v821_v6 = vmul.f32 %v811_v62, %v721_v60 }
 0x23c   : > { %793 = vadd.xlane.f32.xlu1 %v792_v1  ;;  %v822_v7 = vmul.f32 %v815_v63, %v720_v58  ;;  %v722_v8 = vcombine.high %v720_v58, %v720_v58  ;;  %v824_v14 = vsel %vm791_vm2, %v820_v61, 0.0  ;;  %v1723_v59 = vmov 0  }
 0x23d   : > { %v798_v10 = vsel %vm791_vm2, %v789_v2, 0.0  ;;  %v795_v13 = vsel %vm791_vm2, %v788_v4, 0.0  ;;  %v827_v15 = vsel %vm791_vm2, %v821_v6, 0.0  ;;  %1419 = vset.pattern.permute.xlu1 %v1723_v59  ;;  %1420 = vset.pattern.permute.xlu0 %v1723_v59 }
 0x23e   : > { %799 = vadd.xlane.f32.xlu0 %v798_v10  ;;  %v790_v11 = vmul.f32 %v786_v5, %v722_v8  ;;  %v823_v12 = vmul.f32 %v819_v9, %v722_v8  ;;  %v830_v16 = vsel %vm791_vm2, %v822_v7, 0.0  ;;  %v1724_v5 = vmov 1  }
 0x240   : > { %796 = vadd.xlane.f32.xlu1 %v795_v13  ;;  %v801_v18 = vsel %vm791_vm2, %v790_v11, 0.0  ;;  %v833_v19 = vsel %vm791_vm2, %v823_v12, 0.0  ;;  %v1435_v11 = vld [vmem:[#allocation11] sm:$0xff]   ;;  %v1436_v12 = vld [vmem:[#allocation11 + $0x8] sm:$0xff]  }
 0x241   : > { %1312 = vmatpush3.bf16.msra.mxu0 %v1435_v11 }
 0x242   : > { %1313 = vmatprep.subr.bf16.mxu0 %v1719_v0 }
 0x244   : > { %825 = vadd.xlane.f32.xlu1 %v824_v14 }
 0x245   : > { %1314 = vmatpush3.bf16.msra.mxu0 %v1436_v12 }
 0x248   : > { %828 = vadd.xlane.f32.xlu1 %v827_v15 }
 0x24c   : > { %831 = vadd.xlane.f32.xlu1 %v830_v16  ;;  %v757_v16 = vrot.slane %v2099_v17, %v2110_v39 }
 0x250   : > { %802 = vadd.xlane.f32.xlu1 %v801_v18  ;;  %v750_v18 = vcombine.high %v2099_v17, %v2099_v17 }
 0x254   : > { %834 = vadd.xlane.f32.xlu1 %v833_v19 }
 0x2c9   : > { %v794_v20 = vpop.xlane.xlu1 %793 }
 0x2cb   : > { %v800_v28 = vpop.xlane.xlu0 %799 }
 0x2cd   : > { %v797_v21 = vpop.xlane.xlu1 %796 }
 0x2d1   : > { %v826_v22 = vpop.xlane.xlu1 %825 }
 0x2d2   : > { %v837_v23 = vsel %vm836_vm3, %v794_v20, %v826_v22  ;;  %v765_v20 = vcombine.high %v757_v16, %v757_v16 }
 0x2d3   : > { %v842_v24 = vsel %vm841_vm4, %v837_v23, -inf }
 0x2d4   : > { %843 = vmax.xlane.f32.xlu1 %v842_v24 }
 0x2d5   : > { %v829_v25 = vpop.xlane.xlu1 %828 }
 0x2d6   : > { %v838_v26 = vsel %vm836_vm3, %v797_v21, %v829_v25  ;;  %v764_v21 = vrot.slane %v750_v18, %v2110_v39  ;;  %v913_v25 = vrot.slane %v765_v20, %v2115_v47 }
 0x2d7   : > { %v845_v27 = vsel %vm841_vm4, %v838_v26, -inf }
 0x2d8   : > { %846 = vmax.xlane.f32.xlu1 %v845_v27  ;;  %v766_v0 = vcombine.high %v764_v21, %v764_v21  ;;  %v953_v17 = vrot.slane %v764_v21, %v2117_v49 }
 0x2d9   : > { %v832_v29 = vpop.xlane.xlu1 %831 }
 0x2da   : > { %v839_v30 = vsel %vm836_vm3, %v800_v28, %v832_v29  ;;  %v909_v29 = vrot.slane %v757_v16, %v2115_v47 }
 0x2db   : > { %v848_v31 = vsel %vm841_vm4, %v839_v30, -inf }
 0x2dc   : > { %849 = vmax.xlane.f32.xlu1 %v848_v31 }
 0x2dd   : > { %v803_v32 = vpop.xlane.xlu1 %802 }
 0x2e1   : > { %v835_v33 = vpop.xlane.xlu1 %834 }
 0x2e2   : > { %v840_v34 = vsel %vm836_vm3, %v803_v32, %v835_v33  ;;  %v917_v32 = vrot.slane %v764_v21, %v2115_v47  ;;  %v921_v33 = vrot.slane %v766_v0, %v2115_v47 }
 0x2e3   : > { %v851_v35 = vsel %vm841_vm4, %v840_v34, -inf }
 0x2e4   : > { %852 = vmax.xlane.f32.xlu0 %v851_v35 }
 0x361   : > { %v844_v36 = vpop.xlane.xlu1 %843 }
 0x362   : > { %v854_v37 = vsub.f32 %v837_v23, %v844_v36  ;;  %v949_v23 = vrot.slane %v765_v20, %v2117_v49 }
 0x364   : > { %v858_v38 = vmul.f32 1.442695, %v854_v37  ;;  %v957_v37 = vrot.slane %v766_v0, %v2117_v49 }
 0x365   : > { %v847_v40 = vpop.xlane.xlu1 %846 }
 0x366   : > { %1437 = vpow2.f32 %v858_v38  ;;  %v855_v41 = vsub.f32 %v838_v26, %v847_v40  ;;  %v945_v26 = vrot.slane %v757_v16, %v2117_v49 }
 0x368   : > { %v860_v42 = vmul.f32 1.442695, %v855_v41 }
 0x369   : > { %v850_v43 = vpop.xlane.xlu1 %849 }
 0x36a   : > { %1439 = vpow2.f32 %v860_v42  ;;  %v856_v44 = vsub.f32 %v839_v30, %v850_v43 }
 0x36c   : > { %v862_v45 = vmul.f32 1.442695, %v856_v44 }
 0x36e   : > { %1441 = vpow2.f32 %v862_v45 }
 0x370   : > { %v1438_v46 = vpop.eup %1437 }
 0x371   : > { %v853_v48 = vpop.xlane.xlu0 %852  ;;  %v866_v50 = vsel %vm841_vm4, %v1438_v46, 0.0 }
 0x372   : > { %v857_v51 = vsub.f32 %v840_v34, %v853_v48  ;;  %867 = vadd.xlane.f32.xlu1 %v866_v50 }
 0x374   : > { %v1440_v52 = vpop.eup %1439  ;;  %v864_v53 = vmul.f32 1.442695, %v857_v51 }
 0x375   : > { %v869_v54 = vsel %vm841_vm4, %v1440_v52, 0.0 }
 0x376   : > { %1443 = vpow2.f32 %v864_v53  ;;  %870 = vadd.xlane.f32.xlu0 %v869_v54 }
 0x378   : > { %v1442_v55 = vpop.eup %1441 }
 0x379   : > { %v872_v56 = vsel %vm841_vm4, %v1442_v55, 0.0 }
 0x37a   : > { %873 = vadd.xlane.f32.xlu1 %v872_v56 }
 0x380   : > { %v1444_v57 = vpop.eup %1443 }
 0x381   : > { %v875_v58 = vsel %vm841_vm4, %v1444_v57, 0.0 }
 0x382   : > { %876 = vadd.xlane.f32.xlu0 %v875_v58 }
 0x3ff   : > { %v868_v60 = vpop.xlane.xlu1 %867 }
 0x400   : > { %1445 = vrcp.f32 %v868_v60 }
 0x403   : > { %v871_v61 = vpop.xlane.xlu0 %870 }
 0x404   : > { %1447 = vrcp.f32 %v871_v61 }
 0x407   : > { %v874_v62 = vpop.xlane.xlu1 %873 }
 0x408   : > { %1449 = vrcp.f32 %v874_v62 }
 0x40a   : > { %v1446_v63 = vpop.eup %1445 }
 0x40b   : > { %v882_v1 = vmul.f32 %v1446_v63, %v1438_v46 }
 0x40d   : > { %888 = vperm.xlu1 %1419, %v882_v1  }
 0x40e   : > { %v1448_v2 = vpop.eup %1447 }
 0x40f   : > { %v883_v4 = vmul.f32 %v1448_v2, %v1440_v52  ;;  %v877_v7 = vpop.xlane.xlu0 %876  ;;  %v1258_v2 = vld [vmem:[%s2234_s8] ss:$0 sm:$0xff] }
 0x410   : > { %1451 = vrcp.f32 %v877_v7 }
 0x411   : > { %893 = vperm.xlu0 %1420, %v883_v4   ;;  %1421 = vset.pattern.permute.xlu1 %v1724_v5 }
 0x412   : > { %v1450_v6 = vpop.eup %1449  ;;  %927 = vperm.xlu1 %1421, %v882_v1  }
 0x413   : > { %v884_v8 = vmul.f32 %v1450_v6, %v1442_v55 }
 0x415   : > { %1426 = vset.pattern.permute.xlu0 %v1724_v5 }
 0x416   : > { %1422 = vset.pattern.permute.xlu1 %v1723_v59 }
 0x417   : > { %898 = vperm.xlu1 %1422, %v884_v8  }
 0x41a   : > { %v1452_v9 = vpop.eup %1451 }
 0x41b   : > { %1423 = vset.pattern.permute.xlu1 %v1724_v5  ;;  %v885_v10 = vmul.f32 %v1452_v9, %v1444_v57 }
 0x41c   : > { %931 = vperm.xlu1 %1423, %v883_v4  }
 0x420   : > { %935 = vperm.xlu1 %1423, %v884_v8  }
 0x424   : > { %1424 = vset.pattern.permute.xlu1 %v1723_v59 }
 0x425   : > { %903 = vperm.xlu1 %1424, %v885_v10  }
 0x429   : > { %1425 = vset.pattern.permute.xlu1 %v1724_v5  ;;  %v1259_v5 = vld [vmem:[%s2234_s8 + $0x1] ss:$0 sm:$0xff] }
 0x42a   : > { %939 = vperm.xlu1 %1425, %v885_v10  }
 0x48c   : > { %v889_v13 = vpop.permute.xlu1 %888 }
 0x48d   : > { %v922_v34 = vmul.f32 %v909_v29, %v889_v13 }
 0x490   : > { %v894_v24 = vpop.permute.xlu0 %893 }
 0x491   : > { %v928_v14 = vpop.permute.xlu1 %927  ;;  %v923_v30 = vmul.f32 %v913_v25, %v894_v24 }
 0x492   : > { %v958_v31 = vmul.f32 %v945_v26, %v928_v14 }
 0x494   : > { %v962_v40 = vadd.f32 %v958_v31, %v922_v34 }
 0x496   : > { %v899_v15 = vpop.permute.xlu1 %898 }
 0x497   : > { %v924_v41 = vmul.f32 %v917_v32, %v899_v15 }
 0x49b   : > { %v932_v19 = vpop.permute.xlu1 %931 }
 0x49c   : > { %v959_v27 = vmul.f32 %v949_v23, %v932_v19 }
 0x49e   : > { %v963_v35 = vadd.f32 %v959_v27, %v923_v30 }
 0x49f   : > { %v936_v22 = vpop.permute.xlu1 %935 }
 0x4a0   : > { %v960_v36 = vmul.f32 %v953_v17, %v936_v22  ;;  %v970_v44 = vcombine.low %v962_v40, %v963_v35 }
 0x4a2   : > { %v964_v45 = vadd.f32 %v960_v36, %v924_v41  ;;  %v978_v50 = vrot.slane %v970_v44, %v2110_v39 }
 0x4a4   : > { %v904_v28 = vpop.permute.xlu1 %903 }
 0x4a5   : > { %v925_v42 = vmul.f32 %v921_v33, %v904_v28 }
 0x4a9   : > { %v940_v38 = vpop.permute.xlu1 %939 }
 0x4aa   : > { %v961_v43 = vmul.f32 %v957_v37, %v940_v38 }
 0x4ac   : > { %v965_v46 = vadd.f32 %v961_v43, %v925_v42 }
 0x4ae   : > { %v971_v48 = vcombine.low %v964_v45, %v965_v46 }
 0x4b0   : > { %v985_v51 = vrot.slane %v971_v48, %v2110_v39 }
 0x4b2   : > { %v986_v52 = vcombine.low %v978_v50, %v985_v51 }
 0x4b4   : > { %v988_v47 = vpack.c.bf16 %v986_v52, %v986_v52 }
 0x4b6   : > { %1316 = vmatmul.mubr.msk.bf16.vlgmr.msra.gmra.mrb[8].mxu0 %vm468_vm1, %v988_v47 }
 0x589   : > { %v1042_v53 = vpop.f32.mrb[8].mxu0 }
 0x58a   : > { %v1048_v49 = vadd.f32 %v1042_v53, %v2070_v3  ;;  %v1317_v54 = vpop.f32.mrb[9].mxu0 }
 0x58b   : > { %v1045_v55 = vpop.f32.mrb[10].mxu0 }
 0x58c   : > { %v1318_v56 = vpop.f32.mrb[11].mxu0  ;;  %v1049_v57 = vsel %vm468_vm1, %v1048_v49, 0.0 }
 0x58d   : > { %1050 = vadd.xlane.f32.xlu1 %v1049_v57 }
 0x61a   : > { %v1051_v58 = vpop.xlane.xlu1 %1050 }
 0x61b   : > { %v1053_v59 = vmul.f32 0.03125, %v1051_v58 }
 0x61d   : > { %v1054_v60 = vsub.f32 %v1048_v49, %v1053_v59 }
 0x61f   : > { %v1055_v61 = vmul.f32 %v1054_v60, %v1054_v60 }
 0x621   : > { %v1056_v39 = vsel %vm468_vm1, %v1055_v61, 0.0 }
 0x622   : > { %1057 = vadd.xlane.f32.xlu0 %v1056_v39 }
 0x6af   : > { %v1058_v62 = vpop.xlane.xlu0 %1057 }
 0x6b0   : > { %v1059_v63 = vmul.f32 0.03125, %v1058_v62 }
 0x6b2   : > { %v1060_v1 = vadd.f32 1e-05, %v1059_v63 }
 0x6b4   : > { %1453 = vrsqrt.f32 %v1060_v1 }
 0x6be   : > { %v1454_v3 = vpop.eup %1453 }
 0x6bf   : > { %v1062_v4 = vmul.f32 %v1454_v3, %v1054_v60 }
 0x6c1   : > { %v1068_v6 = vmul.f32 %v1258_v2, %v1062_v4 }
 0x6c3   : > { %v1074_v7 = vadd.f32 %v1259_v5, %v1068_v6 }
 0x6c5   : > { %1075 = vst.msk [vmem:[%s442_s17] sm:$0xff] %vm468_vm1, %v1074_v7 }
 0x6c6   : > { %1640 = shalt.err (!%p1637_p6)
}
 0x6c7   : > { %s1641_s21 = scalar_lea.hbm %s2181_s24, 128  ;;  %s1645_s9 = scalar_lea.hbm %s2268_s13, 256 }
 0x6c8   : > { %p1642_p11 = scmp.ne.s32.totalorder %s2181_s24, %s1641_s21  ;;  %p1646_p12 = scmp.lt.u32.totalorder %s2181_s24, %s2268_s13 }
 0x6c9   : > { %p1647_p3 = scmp.lt.u32.totalorder %s1645_s9, %s1641_s21  ;;  %p1649_p0 = scmp.lt.u32.totalorder %s1641_s21, %s2181_s24 }
 0x6ca   : > { %p1643_p1 = pnand %p1642_p11, %p2269_p2 }
 0x6cb   : > { %p1648_p13 = por %p1647_p3, %p1646_p12 }
 0x6cc   : > { %p1644_p9 = pneg %p1643_p1 }
 0x6cd   : > { %p1650_p4 = por %p1649_p0, %p1648_p13 }
 0x6cf   : > { %p1651_p10 = pnand %p1650_p4, %p1644_p9 }
 0x6d1   : > { %1654 = shalt.err (!%p1651_p10)
}
 0x6d2   : > { %1339 = dma.vmem_to_hbm [thread:$0]  (%p2269_p2), %s2183_s6, 128, %s2181_s24, %s1077_s25  }
 0x6d3 PF: > { %s1102_s22 = sand.u32 1, %s1697_s30   ;;  %p2270_p5 = scmp.ne.s32.totalorder %s2258_s28, 0 }
 0x6d4   : > { %p2271_p7 = scmp.ge.s32.totalorder %s1709_s12, 2  ;;  %s1103_s18 = scalar_lea.sflag [#allocation4], %s1102_s22 }
 0x6d6   : > { %p1362_p8 = pnand %p2271_p7, %p2270_p5 }
 0x6d8   : > { %1692 = dma.done.wait (!%p1362_p8), %s1103_s18, 128  }
 0x6d9   : > { %1694 = vsyncadd (!%p1362_p8), %s1103_s18, 4294967168  ;;  %s2272_s17 = sld [smem:[#allocation20_spill]]  ;;  %p27_p6 = scmp.ge.s32.totalorder %s1928_s27, 4  }
 0x6da   : > { %s2273_s30 = smov %s1701_s10  ;;  %s2274_s10 = smov %s1705_s11 }
 0x6db   : > { %s2276_s12 = smov %s1928_s27  ;;  %29 = sbr.rel (!%p27_p6) target bundleno = 15 (0xf), region = 130 }
 0x6df   : > { %s2275_s11 = smov %s2272_s17 }
 0x6e2   :  { %1108 = vsyncpa [#allocation3], 1 }
 0x6e3   :  { %1110 = vsyncpa [#allocation3 + $0x1], 1 }
 0x6e4   :  { %1111 = vsyncpa [#allocation6], 1 }
 0x6e5   :  { %1113 = vsyncpa [#allocation6 + $0x1], 1 }
 0x6e6   :  { %1114 = vsyncpa [#allocation9], 1 }
 0x6e7   :  { %1115 = vsyncpa [#allocation12], 1 }
 0x6e8   :  { %1116 = vsyncpa [#allocation4], 1 }
 0x6e9   :  { %1118 = vsyncpa [#allocation4 + $0x1], 1 }

// kernel: tpu_custom_call.1
= control target key start
LH: loop header
LB: loop body
LE: loop exit
PB: predicated region body
PF: predicated region fallthrough
CT: control target
= control target key end

     0   :  { %s2226_s0 = inlined_call_operand.hbm [shape: f32[16,32], index: 0, kind: input, shape index: {}]   ;;  %s2227_s1 = inlined_call_operand.hbm [shape: f32[16,32], index: 1, kind: input, shape index: {}]   ;;  %s2228_s2 = inlined_call_operand.hbm [shape: bf16[32,32], index: 2, kind: input, shape index: {}]   ;;  %s2229_s3 = inlined_call_operand.hbm [shape: bf16[32,32], index: 3, kind: input, shape index: {}]   ;;  %s2230_s4 = inlined_call_operand.hbm [shape: bf16[32,32], index: 4, kind: input, shape index: {}]   ;;  %s2231_s5 = inlined_call_operand.vmem [shape: bf16[32,32], index: 5, kind: input, shape index: {}]   ;;  %s2232_s6 = inlined_call_operand.hbm [shape: bf16[32,32], index: 6, kind: input, shape index: {}]   ;;  %s2233_s7 = inlined_call_operand.vmem [shape: f32[3,32], index: 7, kind: input, shape index: {}]   ;;  %s2234_s8 = inlined_call_operand.vmem [shape: f32[2,32], index: 8, kind: input, shape index: {}]   ;;  %s2235_s9 = inlined_call_operand.hbm [shape: f32[16,32], index: 9, kind: output, shape index: {}]  }
   0x1   :  { %2241 = sst [smem:[#allocation21_spill]] %s2228_s2 }
   0x2   :  { %2242 = sst [smem:[#allocation22_spill]] %s2229_s3 }
   0x3   :  { %2243 = sst [smem:[#allocation23_spill]] %s2230_s4 }
   0x4   :  { %2244 = sst [smem:[#allocation24_spill]] %s2232_s6 }
   0x5   :  { %2245 = sst [smem:[#allocation25_spill]] %s2235_s9 }
   0x6   :  { %14 = vsyncpa [#allocation3], 0 }
   0x7   :  { %16 = vsyncpa [#allocation3 + $0x1], 0 }
   0x8   :  { %17 = vsyncpa [#allocation6], 0 }
   0x9   :  { %19 = vsyncpa [#allocation6 + $0x1], 0 }
   0xa   :  { %20 = vsyncpa [#allocation9], 0 }
   0xb   :  { %21 = vsyncpa [#allocation12], 0 }
   0xc   :  { %22 = vsyncpa [#allocation4], 0 }
   0xd   :  { %24 = vsyncpa [#allocation4 + $0x1], 0  ;;  %s1776_s30 = smov 0   ;;  %s1778_s10 = smov 0  }
   0xe   :  { %s1780_s11 = smov 0   ;;  %s1782_s12 = smov 0  }
   0xf LB: > { %s1711_s13 = smov [#allocation7]   ;;  %s1797_s15 = sadd.s32 4294967295, %s1709_s12   ;;  %s1709_s12 = sphi %s1782_s12, %s2276_s12   ;;  %s1705_s11 = sphi %s1780_s11, %s2275_s11   ;;  %s1701_s10 = sphi %s1778_s10, %s2274_s10   ;;  %s1697_s30 = sphi %s1776_s30, %s2273_s30  }
  0x10   : > { %s272_s14 = sshll.u32 %s1711_s13, 4  ;;  %p1222_p0 = scmp.ge.s32.totalorder %s1709_s12, 1  ;;  %s1802_s14 = int_to_ptr.vmem [resolvable:$true] %s272_s14 }
  0x11   : > { %p2237_p1 = scmp.eq.s32.totalorder %s1797_s15, 0  ;;  %p260_p2 = scmp.lt.s32.totalorder %s1709_s12, 3 }
  0x12   : > { %s1712_s17 = smov [#allocation8]   ;;  %s1713_s20 = smov [#allocation10]  }
  0x13   : > { %p1804_p3 = pnand %p1222_p0, %p260_p2  ;;  %s285_s18 = sshll.u32 %s1712_s17, 4  ;;  %s1817_s18 = int_to_ptr.vmem [resolvable:$true] %s285_s18 }
  0x14   : > { %s298_s21 = sshll.u32 %s1713_s20, 4  ;;  %s2248_s2 = sld [smem:[#allocation21_spill]]  ;;  %s1819_s21 = int_to_ptr.vmem [resolvable:$true] %s298_s21 }
  0x15   : > { %s2246_s16 = scalar_select %p1804_p3, 1, 0 }
  0x16   : > { %p1341_p5 = pneg %p1804_p3 }
  0x18   : > { %p1813_p6 = pnand %p1341_p5, %p2237_p1 }
  0x1a   : > { %s1455_s24 = scalar_lea.hbm %s2248_s2, 256  ;;  %p1829_p8 = pneg %p1813_p6 }
  0x1b   : > { %p1456_p7 = scmp.ne.s32.totalorder %s2248_s2, %s1455_s24  ;;  %p1462_p11 = scmp.lt.u32.totalorder %s1455_s24, %s2248_s2 }
  0x1d   : > { %p1458_p9 = pnand %p1829_p8, %p1456_p7 }
  0x1f   : > { %p1459_p10 = pneg %p1458_p9 }
  0x21   : > { %p1464_p12 = pnand %p1462_p11, %p1459_p10 }
  0x23   : > { %1467 = shalt.err (!%p1464_p12)
}
  0x24   : > { %s1468_s13 = scalar_lea.vmem %s1802_s14, 256  ;;  %p1476_p5 = scmp.lt.s32.totalorder %s1802_s14, %s1802_s14 }
  0x25   : > { %p1469_p13 = scmp.ne.s32.totalorder %s1802_s14, %s1468_s13  ;;  %p1477_p4 = scmp.lt.s32.totalorder %s1468_s13, %s1468_s13 }
  0x27   : > { %p1471_p0 = pnand %p1469_p13, %p1829_p8  ;;  %p1478_p7 = por %p1477_p4, %p1476_p5 }
  0x29   : > { %p1472_p2 = pneg %p1471_p0 }
  0x2b   : > { %p1479_p9 = pnand %p1478_p7, %p1472_p2 }
  0x2d   : > { %1482 = shalt.err (!%p1479_p9)
}
  0x2e   : > { %s1714_s17 = smov 64   ;;  %s1715_s20 = smov 4  }
  0x2f   : > { %1344 = dma.hbm_to_vmem [thread:$0]  (!%p1813_p6), %s2248_s2, 256, %s1802_s14, [#allocation6], %s1714_s17, %s1714_s17, %s1715_s20  }
  0x30   : > { %s2250_s3 = sld [smem:[#allocation22_spill]] }
  0x36   : > { %s1483_s26 = scalar_lea.hbm %s2250_s3, 256 }
  0x37   : > { %p1484_p4 = scmp.ne.s32.totalorder %s2250_s3, %s1483_s26  ;;  %p1490_p12 = scmp.lt.u32.totalorder %s1483_s26, %s2250_s3 }
  0x39   : > { %p1486_p10 = pnand %p1484_p4, %p1829_p8 }
  0x3b   : > { %p1487_p11 = pneg %p1486_p10 }
  0x3d   : > { %p1492_p13 = pnand %p1490_p12, %p1487_p11 }
  0x3f   : > { %1495 = shalt.err (!%p1492_p13)
}
  0x40   : > { %s1496_s14 = scalar_lea.vmem %s1817_s18, 256  ;;  %p1504_p7 = scmp.lt.s32.totalorder %s1817_s18, %s1817_s18 }
  0x41   : > { %p1497_p0 = scmp.ne.s32.totalorder %s1817_s18, %s1496_s14  ;;  %p1505_p9 = scmp.lt.s32.totalorder %s1496_s14, %s1496_s14 }
  0x43   : > { %p1499_p2 = pnand %p1497_p0, %p1829_p8  ;;  %p1506_p4 = por %p1505_p9, %p1504_p7 }
  0x45   : > { %p1500_p5 = pneg %p1499_p2 }
  0x47   : > { %p1507_p10 = pnand %p1506_p4, %p1500_p5 }
  0x49   : > { %1510 = shalt.err (!%p1507_p10)
}
  0x4a   : > { %1347 = dma.hbm_to_vmem [thread:$0]  (!%p1813_p6), %s2250_s3, 256, %s1817_s18, [#allocation9], %s1714_s17, %s1714_s17, %s1715_s20  }
  0x4b   : > { %s2251_s4 = sld [smem:[#allocation23_spill]] }
  0x51   : > { %s1511_s25 = scalar_lea.hbm %s2251_s4, 256 }
  0x52   : > { %p1512_p11 = scmp.ne.s32.totalorder %s2251_s4, %s1511_s25  ;;  %p1518_p0 = scmp.lt.u32.totalorder %s1511_s25, %s2251_s4 }
  0x54   : > { %p1514_p12 = pnand %p1512_p11, %p1829_p8 }
  0x56   : > { %p1515_p13 = pneg %p1514_p12 }
  0x58   : > { %p1520_p2 = pnand %p1518_p0, %p1515_p13 }
  0x5a   : > { %1523 = shalt.err (!%p1520_p2)
}
  0x5b   : > { %s1524_s18 = scalar_lea.vmem %s1819_s21, 256  ;;  %p1532_p4 = scmp.lt.s32.totalorder %s1819_s21, %s1819_s21 }
  0x5c   : > { %p1525_p5 = scmp.ne.s32.totalorder %s1819_s21, %s1524_s18  ;;  %p1533_p10 = scmp.lt.s32.totalorder %s1524_s18, %s1524_s18 }
  0x5e   : > { %p1527_p7 = pnand %p1525_p5, %p1829_p8  ;;  %p1534_p11 = por %p1533_p10, %p1532_p4 }
  0x60   : > { %p1528_p9 = pneg %p1527_p7 }
  0x62   : > { %p1535_p12 = pnand %p1534_p11, %p1528_p9 }
  0x64   : > { %1538 = shalt.err (!%p1535_p12)
}
  0x65   : > { %1350 = dma.hbm_to_vmem [thread:$0]  (!%p1813_p6), %s2251_s4, 256, %s1819_s21, [#allocation9], %s1714_s17, %s1714_s17, %s1715_s20  }
  0x66   : > { %s1716_s22 = smov [#allocation11]   ;;  %s2252_s6 = sld [smem:[#allocation24_spill]] }
  0x67   : > { %s314_s23 = sshll.u32 %s1716_s22, 4  ;;  %s315_s23 = int_to_ptr.vmem [resolvable:$true] %s314_s23 }
  0x6c   : > { %s1539_s26 = scalar_lea.hbm %s2252_s6, 256 }
  0x6d   : > { %p1540_p13 = scmp.ne.s32.totalorder %s2252_s6, %s1539_s26  ;;  %p1546_p5 = scmp.lt.u32.totalorder %s1539_s26, %s2252_s6 }
  0x6f   : > { %p1542_p0 = pnand %p1540_p13, %p1829_p8 }
  0x71   : > { %p1543_p2 = pneg %p1542_p0 }
  0x73   : > { %p1548_p7 = pnand %p1546_p5, %p1543_p2 }
  0x75   : > { %1551 = shalt.err (!%p1548_p7)
}
  0x76   : > { %s1552_s21 = scalar_lea.vmem %s315_s23, 256  ;;  %p1560_p11 = scmp.lt.s32.totalorder %s315_s23, %s315_s23 }
  0x77   : > { %p1553_p9 = scmp.ne.s32.totalorder %s315_s23, %s1552_s21  ;;  %p1561_p12 = scmp.lt.s32.totalorder %s1552_s21, %s1552_s21 }
  0x79   : > { %p1555_p4 = pnand %p1553_p9, %p1829_p8  ;;  %p1562_p1 = por %p1561_p12, %p1560_p11 }
  0x7b   : > { %p1556_p10 = pneg %p1555_p4 }
  0x7d   : > { %p1563_p3 = pnand %p1562_p1, %p1556_p10 }
  0x7f   : > { %1566 = shalt.err (!%p1563_p3)
}
  0x80   : > { %1353 = dma.hbm_to_vmem [thread:$0]  (!%p1813_p6), %s2252_s6, 256, %s315_s23, [#allocation12], %s1714_s17, %s1714_s17, %s1715_s20  }
  0x81   : > { %s1221_s19 = sadd.s32 4294967294, %s1709_s12   ;;  %s1928_s27 = sadd.s32 1, %s1709_s12  }
  0x82   : > { %s34_s22 = ssub.s32 %s1709_s12, %s1928_s27  ;;  %s37_s24 = sadd.s32 1, %s1705_s11 }
  0x83   : > { %p35_p1 = scmp.eq.s32.totalorder %s34_s22, 0  ;;  %p44_p3 = scmp.ne.s32.totalorder %s1705_s11, %s1701_s10 }
  0x84   : > { %p45_p8 = scmp.eq.s32.totalorder %s1709_s12, 0  ;;  %p50_p13 = scmp.ne.s32.totalorder %s1701_s10, %s1697_s30 }
  0x85   : > { %s1939_s25 = scalar_select %p35_p1, %s1705_s11, %s37_s24  }
  0x86   : > { %p1941_p0 = por %p45_p8, %p44_p3  ;;  %p2255_p2 = scmp.eq.s32.totalorder %s1797_s15, 0 }
  0x87   : > { %2253 = sst [smem:[#allocation20_spill]] %s1939_s25  ;;  %p247_p5 = scmp.eq.s32.totalorder %s1797_s15, 1 }
  0x88   : > { %p1947_p6 = por %p2255_p2, %p50_p13  ;;  %p253_p7 = scmp.eq.s32.totalorder %s1221_s19, 1 }
  0x89   : > { %p1369_p9 = scmp.lt.s32.totalorder %s1709_s12, 2  ;;  %s334_s20 = sand.u32 1, %s1705_s11  }
  0x8a   : > { %s2256_s17 = scalar_select %p1947_p6, 1, 0 }
  0x8b   : > { %p1954_p4 = por %p247_p5, %p44_p3  ;;  %p1958_p10 = por %p253_p7, %p50_p13 }
  0x8c   : > { %s1962_s29 = sshll.u32 %s334_s20, 3  ;;  %s1229_s13 = sshll.u32 %s1709_s12, 7 }
  0x8d   : > { %s2257_s23 = scalar_select %p1954_p4, 1, 0 }
  0x8e   : > { %s2258_s28 = scalar_select %p1958_p10, 1, 0 }
  0x8f   : > { %s1968_s14 = scalar_lea.hbm %s2226_s0, %s1229_s13  ;;  %s338_s9 = scalar_lea.vmem [#allocation2], %s1962_s29 }
  0x90   : > { %s345_s19 = sshll.u32 %s338_s9, 4  ;;  %p1975_p11 = pnand %p1369_p9, %p1941_p0  ;;  %s1971_s19 = int_to_ptr.vmem [resolvable:$true] %s345_s19 }
  0x91   : > { %s1982_s18 = scalar_lea.hbm %s2227_s1, %s1229_s13  ;;  %s352_s21 = sand.u32 1, %s1709_s12  }
  0x92   : > { %s335_s3 = scalar_lea.sflag [#allocation3], %s334_s20  ;;  %s1567_s4 = scalar_lea.hbm %s1968_s14, 128 }
  0x93   : > { %p1568_p12 = scmp.ne.s32.totalorder %s1968_s14, %s1567_s4  ;;  %p1569_p1 = pneg %p1975_p11 }
  0x94   : > { %s1572_s6 = scalar_lea.hbm %s2226_s0, 256  ;;  %p1573_p13 = scmp.lt.u32.totalorder %s1968_s14, %s2226_s0 }
  0x95   : > { %p1570_p3 = pnand %p1569_p1, %p1568_p12  ;;  %p1574_p0 = scmp.lt.u32.totalorder %s1572_s6, %s1567_s4 }
  0x96   : > { %p1576_p5 = scmp.lt.u32.totalorder %s1567_s4, %s1968_s14 }
  0x97   : > { %p1571_p8 = pneg %p1570_p3  ;;  %p1575_p2 = por %p1574_p0, %p1573_p13 }
  0x99   : > { %p1577_p7 = por %p1576_p5, %p1575_p2 }
  0x9b   : > { %p1578_p9 = pnand %p1577_p7, %p1571_p8 }
  0x9d   : > { %1581 = shalt.err (!%p1578_p9)
}
  0x9e   : > { %s1582_s20 = scalar_lea.vmem %s1971_s19, 128  ;;  %s1717_s13 = smov [#allocation2]  }
  0x9f   : > { %p1583_p12 = scmp.ne.s32.totalorder %s1971_s19, %s1582_s20  ;;  %s1587_s24 = sshll.u32 %s1717_s13, 4  ;;  %s1588_s24 = int_to_ptr.vmem [resolvable:$false] %s1587_s24 }
  0xa0   : > { %s1589_s25 = scalar_lea.vmem %s1588_s24, 256  ;;  %p1590_p4 = scmp.lt.s32.totalorder %s1971_s19, %s1588_s24 }
  0xa1   : > { %p1585_p3 = pnand %p1583_p12, %p1569_p1  ;;  %p1591_p13 = scmp.lt.s32.totalorder %s1589_s25, %s1582_s20 }
  0xa3   : > { %p1586_p10 = pneg %p1585_p3  ;;  %p1592_p0 = por %p1591_p13, %p1590_p4 }
  0xa5   : > { %p1593_p2 = pnand %p1592_p0, %p1586_p10 }
  0xa7   : > { %1596 = shalt.err (!%p1593_p2)
}
  0xa8   : > { %1357 = dma.hbm_to_vmem [thread:$0]  (!%p1975_p11), %s1968_s14, 128, %s1971_s19, %s335_s3  }
  0xa9   : > { %s356_s4 = scalar_lea.vmem [#allocation5], %s1962_s29  ;;  %s353_s26 = scalar_lea.sflag [#allocation6], %s352_s21 }
  0xaa   : > { %s363_s6 = sshll.u32 %s356_s4, 4  ;;  %s1597_s9 = scalar_lea.hbm %s1982_s18, 128  ;;  %s364_s6 = int_to_ptr.vmem [resolvable:$true] %s363_s6 }
  0xab   : > { %p1598_p4 = scmp.ne.s32.totalorder %s1982_s18, %s1597_s9  ;;  %s1602_s13 = scalar_lea.hbm %s2227_s1, 256 }
  0xac   : > { %p1603_p5 = scmp.lt.u32.totalorder %s1982_s18, %s2227_s1  ;;  %p1604_p7 = scmp.lt.u32.totalorder %s1602_s13, %s1597_s9 }
  0xad   : > { %p1600_p10 = pnand %p1598_p4, %p1569_p1  ;;  %p1606_p12 = scmp.lt.u32.totalorder %s1597_s9, %s1982_s18 }
  0xae   : > { %p1605_p9 = por %p1604_p7, %p1603_p5 }
  0xaf   : > { %p1601_p8 = pneg %p1600_p10 }
  0xb0   : > { %p1607_p3 = por %p1606_p12, %p1605_p9 }
  0xb2   : > { %p1608_p13 = pnand %p1607_p3, %p1601_p8 }
  0xb4   : > { %1611 = shalt.err (!%p1608_p13)
}
  0xb5   : > { %s1612_s3 = scalar_lea.vmem %s364_s6, 128  ;;  %s1718_s29 = smov [#allocation5]  }
  0xb6   : > { %p1613_p0 = scmp.ne.s32.totalorder %s364_s6, %s1612_s3  ;;  %s1617_s14 = sshll.u32 %s1718_s29, 4  ;;  %s1618_s14 = int_to_ptr.vmem [resolvable:$false] %s1617_s14 }
  0xb7   : > { %s1619_s19 = scalar_lea.vmem %s1618_s14, 256  ;;  %p1620_p10 = scmp.lt.s32.totalorder %s364_s6, %s1618_s14 }
  0xb8   : > { %p1615_p2 = pnand %p1613_p0, %p1569_p1  ;;  %p1621_p6 = scmp.lt.s32.totalorder %s1619_s19, %s1612_s3 }
  0xba   : > { %p1616_p4 = pneg %p1615_p2  ;;  %p1622_p5 = por %p1621_p6, %p1620_p10 }
  0xbc   : > { %p1623_p7 = pnand %p1622_p5, %p1616_p4 }
  0xbe   : > { %1626 = shalt.err (!%p1623_p7)
}
  0xbf   : > { %1360 = dma.hbm_to_vmem [thread:$0]  (!%p1975_p11), %s1982_s18, 128, %s364_s6, %s353_s26  }
  0xc0   : > { %p2260_p8 = scmp.ne.s32.totalorder %s2246_s16, 0 }
  0xc1   : > { %s2035_s21 = sand.u32 (!%p2260_p8), 1, %s1701_s10   ;;  %p2261_p6 = scmp.ne.s32.totalorder (!%p2260_p8), %s2256_s17, 0 }
  0xc2   : > { %372 = sbr.rel (%p2260_p8) target bundleno = 1747 (0x6d3), region = 56  ;;  %s2038_s4 = sshll.u32 (!%p2260_p8), %s2035_s21, 3 }
  0xc3   : > { %s375_s9 = scalar_lea.sflag (!%p2260_p8), [#allocation3], %s2035_s21  ;;  %s378_s2 = scalar_lea.vmem (!%p2260_p8), [#allocation2], %s2038_s4 }
  0xc9   : > { %1672 = dma.done.wait (%p2261_p6), %s375_s9, 128  }
  0xca   : > { %1674 = vsyncadd (%p2261_p6), %s375_s9, 4294967168  ;;  %s383_s16 = sand.u32 1, %s1797_s15   ;;  %s387_s18 = scalar_lea.vmem [#allocation5], %s2038_s4 }
  0xcb   : > { %s384_s22 = scalar_lea.sflag [#allocation6], %s383_s16 }
  0xcc   : > { %1676 = dma.done.wait (%p2261_p6), %s384_s22, 128  }
  0xcd   : > { %1678 = vsyncadd (%p2261_p6), %s384_s22, 4294967168  ;;  %p2262_p11 = scmp.eq.s32.totalorder %s1797_s15, 0 }
  0xcf   : > { %1680 = dma.done.wait (%p2262_p11), [#allocation6], 256   ;;  %p2263_p1 = pmov %p2262_p11 }
  0xd1   : > { %1682 = vsyncadd (%p2263_p1), [#allocation6], 4294967040  ;;  %p2264_p9 = pmov %p2263_p1 }
  0xd2   : > { %p2265_p12 = pmov %p2263_p1 }
  0xd3   : > { %1684 = dma.done.wait (%p2264_p9), [#allocation9], 512  }
  0xd4   : > { %1686 = vsyncadd (%p2265_p12), [#allocation9], 4294966784  ;;  %p2266_p3 = pmov %p2263_p1 }
  0xd5   : > { %p2267_p13 = pmov %p2263_p1 }
  0xd6   : > { %1688 = dma.done.wait (%p2266_p3), [#allocation12], 256  }
  0xd7   : > { %1690 = vsyncadd (%p2267_p13), [#allocation12], 4294967040  ;;  %v1719_v0 = vmov 0.0   ;;  %vm1720_vm0 = vmmov 0   ;;  %v1427_v1 = vld [vmem:[#allocation8] sm:$0xff]   ;;  %v1428_v2 = vld [vmem:[#allocation8 + $0x8] sm:$0xff]   ;;  %v710_v35 = vlaneseq }
  0xd8   : > { %1279 = vmatprep.subr.bf16.mxu0 %v1719_v0  ;;  %1283 = vmatprep.mubr.msk.bf16.mxu0 %vm1720_vm0, %v1719_v0  ;;  %v2070_v3 = vld [vmem:[%s378_s2] sm:$0xff]  ;;  %vm468_vm1 = vcmask 261120   ;;  %v446_v9 = vld [vmem:[%s387_s18] sm:$0xff]  ;;  %s1721_s29 = smov 32   ;;  %v1722_v33 = vmov 1983009808  }
  0xd9   : > { %1287 = vmatprep.subr.bf16.mxu1 %v1719_v0  ;;  %1291 = vmatprep.mubr.msk.bf16.mxu1 %vm1720_vm0, %v1719_v0  ;;  %v445_v4 = vpack.c.bf16 %v2070_v3, %v2070_v3  ;;  %v1431_v5 = vld [vmem:[#allocation10] sm:$0xff]   ;;  %v1432_v7 = vld [vmem:[#allocation10 + $0x8] sm:$0xff]   ;;  %v447_v11 = vpack.c.bf16 %v446_v9, %v446_v9  ;;  %v708_v34 = vunpack.c.l.s4 %v1722_v33  ;;  %v711_v37 = vshrl.u32 %v710_v35, 7  ;;  %s1261_s18 = sshll.u32 %s1797_s15, 7  ;;  %s442_s17 = scalar_lea.vmem [#allocation13], %s2038_s4 }
  0xda   : > { %1280 = vmatpush3.bf16.msra.mxu0 %v1427_v1  ;;  %v1429_v6 = vld [vmem:[%s2231_s5] sm:$0xff]   ;;  %1288 = vmatpush3.bf16.msra.mxu1 %v1431_v5  ;;  %v1430_v8 = vld [vmem:[%s2231_s5 + $0x8] sm:$0xff]   ;;  %vm791_vm2 = vcmask 517120   ;;  %vm836_vm3 = vcmask 7168   ;;  %vm841_vm4 = vcmask 9216   ;;  %s1090_s6 = sshll.u32 %s442_s17, 4  ;;  %s2183_s6 = int_to_ptr.vmem [resolvable:$true] %s1090_s6 }
  0xdb   : > { %1281 = vmatprep.subr.bf16.mxu0 %v1719_v0  ;;  %1289 = vmatprep.subr.bf16.mxu1 %v1719_v0  ;;  %v1433_v10 = vld [vmem:[#allocation7] sm:$0xff]   ;;  %v1434_v12 = vld [vmem:[#allocation7 + $0x8] sm:$0xff]   ;;  %v709_v36 = vunpack.c.0.s8 %v708_v34  ;;  %v2115_v47 = vsub.s32 0, %v711_v37  ;;  %v2117_v49 = vsub.s32 1, %v711_v37  ;;  %s2268_s13 = sld [smem:[#allocation25_spill]]  ;;  %s1077_s25 = scalar_lea.sflag [#allocation4], %s2035_s21 }
  0xdc   : > { %v1246_v18 = vld [vmem:[%s2233_s7 + $0x2] ss:$0 sm:$0xff]  ;;  %v1254_v25 = vld [vmem:[%s2233_s7 + $0x1] ss:$0 sm:$0xff]  ;;  %v1250_v38 = vld [vmem:[%s2233_s7] ss:$0 sm:$0xff] }
  0xdd   : > { %v2110_v39 = vsub.s32 %v709_v36, %v711_v37  ;;  %s1627_s3 = scalar_lea.vmem %s2183_s6, 128  ;;  %p2269_p2 = scmp.ne.s32.totalorder %s2257_s23, 0 }
  0xde   : > { %1282 = vmatpush3.bf16.msra.mxu0 %v1428_v2  ;;  %1290 = vmatpush3.bf16.msra.mxu1 %v1432_v7  ;;  %p1628_p0 = scmp.ne.s32.totalorder %s2183_s6, %s1627_s3  ;;  %s1725_s15 = smov [#allocation13]  }
  0xdf   : > { %1295 = vmatprep.subr.bf16.mxu0 %v1719_v0  ;;  %1303 = vmatprep.subr.bf16.mxu1 %v1719_v0  ;;  %s1631_s4 = sshll.u32 %s1725_s15, 4  ;;  %s1632_s4 = int_to_ptr.vmem [resolvable:$false] %s1631_s4 }
  0xe0   : > { %p1629_p4 = pnand %p1628_p0, %p2269_p2  ;;  %p1634_p5 = scmp.lt.s32.totalorder %s2183_s6, %s1632_s4 }
  0xe1   : > { %1284 = vmatmul.mubr.msk.bf16.vlgmr.msra.gmra.mrb[0].mxu0 %vm468_vm1, %v445_v4  ;;  %1292 = vmatmul.mubr.msk.bf16.vlgmr.msra.gmra.mrb[0].mxu1 %vm468_vm1, %v445_v4  ;;  %s2181_s24 = scalar_lea.hbm %s2268_s13, %s1261_s18 }
  0xe2   : > { %1296 = vmatpush3.bf16.msra.mxu0 %v1429_v6  ;;  %1299 = vmatprep.mubr.msk.bf16.mxu0 %vm1720_vm0, %v1719_v0  ;;  %p1630_p10 = pneg %p1629_p4 }
  0xe3   : > { %1297 = vmatprep.subr.bf16.mxu0 %v1719_v0  ;;  %1304 = vmatpush3.bf16.msra.mxu1 %v1433_v10 }
  0xe4   : > { %1307 = vmatprep.mubr.msk.bf16.mxu1 %vm1720_vm0, %v1719_v0  ;;  %1305 = vmatprep.subr.bf16.mxu1 %v1719_v0 }
  0xe6   : > { %1298 = vmatpush3.bf16.msra.mxu0 %v1430_v8 }
  0xe7   : > { %1311 = vmatprep.subr.bf16.mxu0 %v1719_v0  ;;  %1306 = vmatpush3.bf16.msra.mxu1 %v1434_v12 }
  0xe9   : > { %1300 = vmatmul.mubr.msk.bf16.vlgmr.msra.gmra.mrb[4].mxu0 %vm468_vm1, %v447_v11 }
  0xea   : > { %1315 = vmatprep.mubr.msk.bf16.mxu0 %vm1720_vm0, %v1719_v0  ;;  %1308 = vmatmul.mubr.msk.bf16.vlgmr.msra.gmra.mrb[4].mxu1 %vm468_vm1, %v445_v4 }
 0x1b4   : > { %v506_v13 = vpop.f32.mrb[0].mxu0  ;;  %v2099_v17 = vpop.f32.mrb[0].mxu1 }
 0x1b5   : > { %v1285_v14 = vpop.f32.mrb[1].mxu0  ;;  %v1293_v19 = vpop.f32.mrb[1].mxu1  ;;  %v694_v28 = vadd.f32 %v1254_v25, %v506_v13 }
 0x1b6   : > { %v509_v15 = vpop.f32.mrb[2].mxu0  ;;  %v565_v20 = vpop.f32.mrb[2].mxu1 }
 0x1b7   : > { %v1286_v16 = vpop.f32.mrb[3].mxu0  ;;  %v1294_v22 = vpop.f32.mrb[3].mxu1 }
 0x1bc   : > { %v626_v21 = vpop.f32.mrb[4].mxu0 }
 0x1bd   : > { %v627_v23 = vadd.f32 %v1246_v18, %v626_v21  ;;  %v1301_v24 = vpop.f32.mrb[5].mxu0  ;;  %v684_v29 = vpop.f32.mrb[4].mxu1 }
 0x1be   : > { %v629_v26 = vpop.f32.mrb[6].mxu0  ;;  %v1309_v30 = vpop.f32.mrb[5].mxu1  ;;  %v685_v41 = vadd.f32 %v1250_v38, %v684_v29 }
 0x1bf   : > { %701 = vrot.lane.b32.xlu0 %v627_v23, %s1721_s29  ;;  %v1302_v27 = vpop.f32.mrb[7].mxu0  ;;  %v687_v31 = vpop.f32.mrb[6].mxu1 }
 0x1c0   : > { %v1310_v32 = vpop.f32.mrb[7].mxu1 }
 0x1c3   : > { %696 = vrot.lane.b32.xlu0 %v694_v28, %s1721_s29  ;;  %s1633_s29 = scalar_lea.vmem %s1632_s4, 256 }
 0x1c4   : > { %p1635_p7 = scmp.lt.s32.totalorder %s1633_s29, %s1627_s3 }
 0x1c6   : > { %p1636_p8 = por %p1635_p7, %p1634_p5 }
 0x1c8   : > { %p1637_p6 = pnand %p1636_p8, %p1630_p10 }
 0x231   : > { %v702_v40 = vpop.permute.xlu0 %701 }
 0x232   : > { %v704_v42 = vsel %vm468_vm1, %v506_v13, %v702_v40 }
 0x233   : > { %v728_v43 = vcombine.high %v704_v42, %v704_v42  ;;  %v735_v44 = vrot.slane %v704_v42, %v2110_v39 }
 0x235   : > { %v742_v45 = vrot.slane %v728_v43, %v2110_v39  ;;  %v697_v46 = vpop.permute.xlu0 %696  ;;  %v743_v48 = vcombine.high %v735_v44, %v735_v44  ;;  %v774_v53 = vrot.slane %v735_v44, %v2115_v47  ;;  %v807_v54 = vrot.slane %v735_v44, %v2117_v49 }
 0x236   : > { %v699_v50 = vsel %vm468_vm1, %v685_v41, %v697_v46 }
 0x237   : > { %v706_v51 = vcombine.high %v699_v50, %v699_v50  ;;  %v713_v52 = vrot.slane %v699_v50, %v2110_v39  ;;  %v782_v55 = vrot.slane %v742_v45, %v2115_v47  ;;  %v778_v56 = vrot.slane %v743_v48, %v2115_v47 }
 0x238   : > { %v744_v57 = vcombine.high %v742_v45, %v742_v45  ;;  %v811_v62 = vrot.slane %v743_v48, %v2117_v49  ;;  %v815_v63 = vrot.slane %v742_v45, %v2117_v49 }
 0x239   : > { %v720_v58 = vrot.slane %v706_v51, %v2110_v39  ;;  %v787_v59 = vmul.f32 %v774_v53, %v713_v52  ;;  %v721_v60 = vcombine.high %v713_v52, %v713_v52  ;;  %v820_v61 = vmul.f32 %v807_v54, %v713_v52 }
 0x23a   : > { %v786_v5 = vrot.slane %v744_v57, %v2115_v47  ;;  %v819_v9 = vrot.slane %v744_v57, %v2117_v49 }
 0x23b   : > { %v792_v1 = vsel %vm791_vm2, %v787_v59, 0.0  ;;  %v789_v2 = vmul.f32 %v782_v55, %v720_v58  ;;  %v788_v4 = vmul.f32 %v778_v56, %v721_v60  ;;  %v821_v6 = vmul.f32 %v811_v62, %v721_v60 }
 0x23c   : > { %793 = vadd.xlane.f32.xlu1 %v792_v1  ;;  %v822_v7 = vmul.f32 %v815_v63, %v720_v58  ;;  %v722_v8 = vcombine.high %v720_v58, %v720_v58  ;;  %v824_v14 = vsel %vm791_vm2, %v820_v61, 0.0  ;;  %v1723_v59 = vmov 0  }
 0x23d   : > { %v798_v10 = vsel %vm791_vm2, %v789_v2, 0.0  ;;  %v795_v13 = vsel %vm791_vm2, %v788_v4, 0.0  ;;  %v827_v15 = vsel %vm791_vm2, %v821_v6, 0.0  ;;  %1419 = vset.pattern.permute.xlu1 %v1723_v59  ;;  %1420 = vset.pattern.permute.xlu0 %v1723_v59 }
 0x23e   : > { %799 = vadd.xlane.f32.xlu0 %v798_v10  ;;  %v790_v11 = vmul.f32 %v786_v5, %v722_v8  ;;  %v823_v12 = vmul.f32 %v819_v9, %v722_v8  ;;  %v830_v16 = vsel %vm791_vm2, %v822_v7, 0.0  ;;  %v1724_v5 = vmov 1  }
 0x240   : > { %796 = vadd.xlane.f32.xlu1 %v795_v13  ;;  %v801_v18 = vsel %vm791_vm2, %v790_v11, 0.0  ;;  %v833_v19 = vsel %vm791_vm2, %v823_v12, 0.0  ;;  %v1435_v11 = vld [vmem:[#allocation11] sm:$0xff]   ;;  %v1436_v12 = vld [vmem:[#allocation11 + $0x8] sm:$0xff]  }
 0x241   : > { %1312 = vmatpush3.bf16.msra.mxu0 %v1435_v11 }
 0x242   : > { %1313 = vmatprep.subr.bf16.mxu0 %v1719_v0 }
 0x244   : > { %825 = vadd.xlane.f32.xlu1 %v824_v14 }
 0x245   : > { %1314 = vmatpush3.bf16.msra.mxu0 %v1436_v12 }
 0x248   : > { %828 = vadd.xlane.f32.xlu1 %v827_v15 }
 0x24c   : > { %831 = vadd.xlane.f32.xlu1 %v830_v16  ;;  %v757_v16 = vrot.slane %v2099_v17, %v2110_v39 }
 0x250   : > { %802 = vadd.xlane.f32.xlu1 %v801_v18  ;;  %v750_v18 = vcombine.high %v2099_v17, %v2099_v17 }
 0x254   : > { %834 = vadd.xlane.f32.xlu1 %v833_v19 }
 0x2c9   : > { %v794_v20 = vpop.xlane.xlu1 %793 }
 0x2cb   : > { %v800_v28 = vpop.xlane.xlu0 %799 }
 0x2cd   : > { %v797_v21 = vpop.xlane.xlu1 %796 }
 0x2d1   : > { %v826_v22 = vpop.xlane.xlu1 %825 }
 0x2d2   : > { %v837_v23 = vsel %vm836_vm3, %v794_v20, %v826_v22  ;;  %v765_v20 = vcombine.high %v757_v16, %v757_v16 }
 0x2d3   : > { %v842_v24 = vsel %vm841_vm4, %v837_v23, -inf }
 0x2d4   : > { %843 = vmax.xlane.f32.xlu1 %v842_v24 }
 0x2d5   : > { %v829_v25 = vpop.xlane.xlu1 %828 }
 0x2d6   : > { %v838_v26 = vsel %vm836_vm3, %v797_v21, %v829_v25  ;;  %v764_v21 = vrot.slane %v750_v18, %v2110_v39  ;;  %v913_v25 = vrot.slane %v765_v20, %v2115_v47 }
 0x2d7   : > { %v845_v27 = vsel %vm841_vm4, %v838_v26, -inf }
 0x2d8   : > { %846 = vmax.xlane.f32.xlu1 %v845_v27  ;;  %v766_v0 = vcombine.high %v764_v21, %v764_v21  ;;  %v953_v17 = vrot.slane %v764_v21, %v2117_v49 }
 0x2d9   : > { %v832_v29 = vpop.xlane.xlu1 %831 }
 0x2da   : > { %v839_v30 = vsel %vm836_vm3, %v800_v28, %v832_v29  ;;  %v909_v29 = vrot.slane %v757_v16, %v2115_v47 }
 0x2db   : > { %v848_v31 = vsel %vm841_vm4, %v839_v30, -inf }
 0x2dc   : > { %849 = vmax.xlane.f32.xlu1 %v848_v31 }
 0x2dd   : > { %v803_v32 = vpop.xlane.xlu1 %802 }
 0x2e1   : > { %v835_v33 = vpop.xlane.xlu1 %834 }
 0x2e2   : > { %v840_v34 = vsel %vm836_vm3, %v803_v32, %v835_v33  ;;  %v917_v32 = vrot.slane %v764_v21, %v2115_v47  ;;  %v921_v33 = vrot.slane %v766_v0, %v2115_v47 }
 0x2e3   : > { %v851_v35 = vsel %vm841_vm4, %v840_v34, -inf }
 0x2e4   : > { %852 = vmax.xlane.f32.xlu0 %v851_v35 }
 0x361   : > { %v844_v36 = vpop.xlane.xlu1 %843 }
 0x362   : > { %v854_v37 = vsub.f32 %v837_v23, %v844_v36  ;;  %v949_v23 = vrot.slane %v765_v20, %v2117_v49 }
 0x364   : > { %v858_v38 = vmul.f32 1.442695, %v854_v37  ;;  %v957_v37 = vrot.slane %v766_v0, %v2117_v49 }
 0x365   : > { %v847_v40 = vpop.xlane.xlu1 %846 }
 0x366   : > { %1437 = vpow2.f32 %v858_v38  ;;  %v855_v41 = vsub.f32 %v838_v26, %v847_v40  ;;  %v945_v26 = vrot.slane %v757_v16, %v2117_v49 }
 0x368   : > { %v860_v42 = vmul.f32 1.442695, %v855_v41 }
 0x369   : > { %v850_v43 = vpop.xlane.xlu1 %849 }
 0x36a   : > { %1439 = vpow2.f32 %v860_v42  ;;  %v856_v44 = vsub.f32 %v839_v30, %v850_v43 }
 0x36c   : > { %v862_v45 = vmul.f32 1.442695, %v856_v44 }
 0x36e   : > { %1441 = vpow2.f32 %v862_v45 }
 0x370   : > { %v1438_v46 = vpop.eup %1437 }
 0x371   : > { %v853_v48 = vpop.xlane.xlu0 %852  ;;  %v866_v50 = vsel %vm841_vm4, %v1438_v46, 0.0 }
 0x372   : > { %v857_v51 = vsub.f32 %v840_v34, %v853_v48  ;;  %867 = vadd.xlane.f32.xlu1 %v866_v50 }
 0x374   : > { %v1440_v52 = vpop.eup %1439  ;;  %v864_v53 = vmul.f32 1.442695, %v857_v51 }
 0x375   : > { %v869_v54 = vsel %vm841_vm4, %v1440_v52, 0.0 }
 0x376   : > { %1443 = vpow2.f32 %v864_v53  ;;  %870 = vadd.xlane.f32.xlu0 %v869_v54 }
 0x378   : > { %v1442_v55 = vpop.eup %1441 }
 0x379   : > { %v872_v56 = vsel %vm841_vm4, %v1442_v55, 0.0 }
 0x37a   : > { %873 = vadd.xlane.f32.xlu1 %v872_v56 }
 0x380   : > { %v1444_v57 = vpop.eup %1443 }
 0x381   : > { %v875_v58 = vsel %vm841_vm4, %v1444_v57, 0.0 }
 0x382   : > { %876 = vadd.xlane.f32.xlu0 %v875_v58 }
 0x3ff   : > { %v868_v60 = vpop.xlane.xlu1 %867 }
 0x400   : > { %1445 = vrcp.f32 %v868_v60 }
 0x403   : > { %v871_v61 = vpop.xlane.xlu0 %870 }
 0x404   : > { %1447 = vrcp.f32 %v871_v61 }
 0x407   : > { %v874_v62 = vpop.xlane.xlu1 %873 }
 0x408   : > { %1449 = vrcp.f32 %v874_v62 }
 0x40a   : > { %v1446_v63 = vpop.eup %1445 }
 0x40b   : > { %v882_v1 = vmul.f32 %v1446_v63, %v1438_v46 }
 0x40d   : > { %888 = vperm.xlu1 %1419, %v882_v1  }
 0x40e   : > { %v1448_v2 = vpop.eup %1447 }
 0x40f   : > { %v883_v4 = vmul.f32 %v1448_v2, %v1440_v52  ;;  %v877_v7 = vpop.xlane.xlu0 %876  ;;  %v1258_v2 = vld [vmem:[%s2234_s8] ss:$0 sm:$0xff] }
 0x410   : > { %1451 = vrcp.f32 %v877_v7 }
 0x411   : > { %893 = vperm.xlu0 %1420, %v883_v4   ;;  %1421 = vset.pattern.permute.xlu1 %v1724_v5 }
 0x412   : > { %v1450_v6 = vpop.eup %1449  ;;  %927 = vperm.xlu1 %1421, %v882_v1  }
 0x413   : > { %v884_v8 = vmul.f32 %v1450_v6, %v1442_v55 }
 0x415   : > { %1426 = vset.pattern.permute.xlu0 %v1724_v5 }
 0x416   : > { %1422 = vset.pattern.permute.xlu1 %v1723_v59 }
 0x417   : > { %898 = vperm.xlu1 %1422, %v884_v8  }
 0x41a   : > { %v1452_v9 = vpop.eup %1451 }
 0x41b   : > { %1423 = vset.pattern.permute.xlu1 %v1724_v5  ;;  %v885_v10 = vmul.f32 %v1452_v9, %v1444_v57 }
 0x41c   : > { %931 = vperm.xlu1 %1423, %v883_v4  }
 0x420   : > { %935 = vperm.xlu1 %1423, %v884_v8  }
 0x424   : > { %1424 = vset.pattern.permute.xlu1 %v1723_v59 }
 0x425   : > { %903 = vperm.xlu1 %1424, %v885_v10  }
 0x429   : > { %1425 = vset.pattern.permute.xlu1 %v1724_v5  ;;  %v1259_v5 = vld [vmem:[%s2234_s8 + $0x1] ss:$0 sm:$0xff] }
 0x42a   : > { %939 = vperm.xlu1 %1425, %v885_v10  }
 0x48c   : > { %v889_v13 = vpop.permute.xlu1 %888 }
 0x48d   : > { %v922_v34 = vmul.f32 %v909_v29, %v889_v13 }
 0x490   : > { %v894_v24 = vpop.permute.xlu0 %893 }
 0x491   : > { %v928_v14 = vpop.permute.xlu1 %927  ;;  %v923_v30 = vmul.f32 %v913_v25, %v894_v24 }
 0x492   : > { %v958_v31 = vmul.f32 %v945_v26, %v928_v14 }
 0x494   : > { %v962_v40 = vadd.f32 %v958_v31, %v922_v34 }
 0x496   : > { %v899_v15 = vpop.permute.xlu1 %898 }
 0x497   : > { %v924_v41 = vmul.f32 %v917_v32, %v899_v15 }
 0x49b   : > { %v932_v19 = vpop.permute.xlu1 %931 }
 0x49c   : > { %v959_v27 = vmul.f32 %v949_v23, %v932_v19 }
 0x49e   : > { %v963_v35 = vadd.f32 %v959_v27, %v923_v30 }
 0x49f   : > { %v936_v22 = vpop.permute.xlu1 %935 }
 0x4a0   : > { %v960_v36 = vmul.f32 %v953_v17, %v936_v22  ;;  %v970_v44 = vcombine.low %v962_v40, %v963_v35 }
 0x4a2   : > { %v964_v45 = vadd.f32 %v960_v36, %v924_v41  ;;  %v978_v50 = vrot.slane %v970_v44, %v2110_v39 }
 0x4a4   : > { %v904_v28 = vpop.permute.xlu1 %903 }
 0x4a5   : > { %v925_v42 = vmul.f32 %v921_v33, %v904_v28 }
 0x4a9   : > { %v940_v38 = vpop.permute.xlu1 %939 }
 0x4aa   : > { %v961_v43 = vmul.f32 %v957_v37, %v940_v38 }
 0x4ac   : > { %v965_v46 = vadd.f32 %v961_v43, %v925_v42 }
 0x4ae   : > { %v971_v48 = vcombine.low %v964_v45, %v965_v46 }
 0x4b0   : > { %v985_v51 = vrot.slane %v971_v48, %v2110_v39 }
 0x4b2   : > { %v986_v52 = vcombine.low %v978_v50, %v985_v51 }
 0x4b4   : > { %v988_v47 = vpack.c.bf16 %v986_v52, %v986_v52 }
 0x4b6   : > { %1316 = vmatmul.mubr.msk.bf16.vlgmr.msra.gmra.mrb[8].mxu0 %vm468_vm1, %v988_v47 }
 0x589   : > { %v1042_v53 = vpop.f32.mrb[8].mxu0 }
 0x58a   : > { %v1048_v49 = vadd.f32 %v1042_v53, %v2070_v3  ;;  %v1317_v54 = vpop.f32.mrb[9].mxu0 }
 0x58b   : > { %v1045_v55 = vpop.f32.mrb[10].mxu0 }
 0x58c   : > { %v1318_v56 = vpop.f32.mrb[11].mxu0  ;;  %v1049_v57 = vsel %vm468_vm1, %v1048_v49, 0.0 }
 0x58d   : > { %1050 = vadd.xlane.f32.xlu1 %v1049_v57 }
 0x61a   : > { %v1051_v58 = vpop.xlane.xlu1 %1050 }
 0x61b   : > { %v1053_v59 = vmul.f32 0.03125, %v1051_v58 }
 0x61d   : > { %v1054_v60 = vsub.f32 %v1048_v49, %v1053_v59 }
 0x61f   : > { %v1055_v61 = vmul.f32 %v1054_v60, %v1054_v60 }
 0x621   : > { %v1056_v39 = vsel %vm468_vm1, %v1055_v61, 0.0 }
 0x622   : > { %1057 = vadd.xlane.f32.xlu0 %v1056_v39 }
 0x6af   : > { %v1058_v62 = vpop.xlane.xlu0 %1057 }
 0x6b0   : > { %v1059_v63 = vmul.f32 0.03125, %v1058_v62 }
 0x6b2   : > { %v1060_v1 = vadd.f32 1e-05, %v1059_v63 }
 0x6b4   : > { %1453 = vrsqrt.f32 %v1060_v1 }
 0x6be   : > { %v1454_v3 = vpop.eup %1453 }
 0x6bf   : > { %v1062_v4 = vmul.f32 %v1454_v3, %v1054_v60 }
 0x6c1   : > { %v1068_v6 = vmul.f32 %v1258_v2, %v1062_v4 }
 0x6c3   : > { %v1074_v7 = vadd.f32 %v1259_v5, %v1068_v6 }
 0x6c5   : > { %1075 = vst.msk [vmem:[%s442_s17] sm:$0xff] %vm468_vm1, %v1074_v7 }
 0x6c6   : > { %1640 = shalt.err (!%p1637_p6)
}
 0x6c7   : > { %s1641_s21 = scalar_lea.hbm %s2181_s24, 128  ;;  %s1645_s9 = scalar_lea.hbm %s2268_s13, 256 }
 0x6c8   : > { %p1642_p11 = scmp.ne.s32.totalorder %s2181_s24, %s1641_s21  ;;  %p1646_p12 = scmp.lt.u32.totalorder %s2181_s24, %s2268_s13 }
 0x6c9   : > { %p1647_p3 = scmp.lt.u32.totalorder %s1645_s9, %s1641_s21  ;;  %p1649_p0 = scmp.lt.u32.totalorder %s1641_s21, %s2181_s24 }
 0x6ca   : > { %p1643_p1 = pnand %p1642_p11, %p2269_p2 }
 0x6cb   : > { %p1648_p13 = por %p1647_p3, %p1646_p12 }
 0x6cc   : > { %p1644_p9 = pneg %p1643_p1 }
 0x6cd   : > { %p1650_p4 = por %p1649_p0, %p1648_p13 }
 0x6cf   : > { %p1651_p10 = pnand %p1650_p4, %p1644_p9 }
 0x6d1   : > { %1654 = shalt.err (!%p1651_p10)
}
 0x6d2   : > { %1339 = dma.vmem_to_hbm [thread:$0]  (%p2269_p2), %s2183_s6, 128, %s2181_s24, %s1077_s25  }
 0x6d3 PF: > { %s1102_s22 = sand.u32 1, %s1697_s30   ;;  %p2270_p5 = scmp.ne.s32.totalorder %s2258_s28, 0 }
 0x6d4   : > { %p2271_p7 = scmp.ge.s32.totalorder %s1709_s12, 2  ;;  %s1103_s18 = scalar_lea.sflag [#allocation4], %s1102_s22 }
 0x6d6   : > { %p1362_p8 = pnand %p2271_p7, %p2270_p5 }
 0x6d8   : > { %1692 = dma.done.wait (!%p1362_p8), %s1103_s18, 128  }
 0x6d9   : > { %1694 = vsyncadd (!%p1362_p8), %s1103_s18, 4294967168  ;;  %s2272_s17 = sld [smem:[#allocation20_spill]]  ;;  %p27_p6 = scmp.ge.s32.totalorder %s1928_s27, 4  }
 0x6da   : > { %s2273_s30 = smov %s1701_s10  ;;  %s2274_s10 = smov %s1705_s11 }
 0x6db   : > { %s2276_s12 = smov %s1928_s27  ;;  %29 = sbr.rel (!%p27_p6) target bundleno = 15 (0xf), region = 130 }
 0x6df   : > { %s2275_s11 = smov %s2272_s17 }
 0x6e2   :  { %1108 = vsyncpa [#allocation3], 1 }
 0x6e3   :  { %1110 = vsyncpa [#allocation3 + $0x1], 1 }
 0x6e4   :  { %1111 = vsyncpa [#allocation6], 1 }
 0x6e5   :  { %1113 = vsyncpa [#allocation6 + $0x1], 1 }
 0x6e6   :  { %1114 = vsyncpa [#allocation9], 1 }
 0x6e7   :  { %1115 = vsyncpa [#allocation12], 1 }
 0x6e8   :  { %1116 = vsyncpa [#allocation4], 1 }
 0x6e9   :  { %1118 = vsyncpa [#allocation4 + $0x1], 1 }

</bundles_post_ra>
